<compile_context>
chip_gen: v7x
topology: tpu7x:2x2x1
jax: 0.10.0
libtpu: 0.0.40
codegen_flags: <defaults>
</compile_context>

<pallas_src>
import functools
import math

import jax
import jax.numpy as jnp
from jax import lax
from jax.experimental import pallas as pl
from jax.experimental.pallas import tpu as pltpu


def _encoder_block_kernel(x_ref, w_ref, out_ref, *, num_heads, num_features,
                          batch, seq_len):
    """Single grid step: fused QKV projection (all batches/heads) + attention."""
    F_, H, B, L = num_features, num_heads, batch, seq_len

    x = x_ref[...]          # (C_aug, B*L)   MXU dtype; last rows = ones (bias) / zero pad
    w = w_ref[...]          # (H*3F, C_aug)  MXU dtype; bias column + q-scale folded in

    # One wide projection matmul for all heads, all of q/k/v, and ALL batch elements.
    qkv = jnp.dot(w, x, preferred_element_type=jnp.float32)        # (H*3F, B*L) f32

    mxu_dtype = w.dtype
    qkv_mxu = qkv.astype(mxu_dtype)          # single bulk cast (not per head / per q,k,v)

    # Attention is independent per (batch, head); B and H are tiny -> static unroll.
    for h in range(H):                       # q rows were pre-scaled by 1/sqrt(d_k)
        base = 3 * F_ * h
        for b in range(B):
            col = b * L
            q = qkv_mxu[base:base + F_, col:col + L]                # (F, L)
            k = qkv_mxu[base + F_:base + 2 * F_, col:col + L]       # (F, L)
            v = qkv_mxu[base + 2 * F_:base + 3 * F_, col:col + L]   # (F, L)

            # scores[i, j] = <q_i, k_j>  (contract last dims -> no explicit k.T / XLU work)
            scores = lax.dot_general(
                q, k,
                dimension_numbers=(((1,), (1,)), ((), ())),
                preferred_element_type=jnp.float32)                 # (F, F) f32

            # Numerically stable softmax in f32; divide -> EUP reciprocal (free slot).
            m = jnp.max(scores, axis=-1, keepdims=True)
            e = jnp.exp(scores - m)
            p = e * pl.reciprocal(jnp.sum(e, axis=-1, keepdims=True), approx=True)

            attn = jnp.dot(p.astype(mxu_dtype), v,
                           preferred_element_type=jnp.float32)      # (F, L) f32

            # Direct store into the lane-dense (F, B*H*L) output slab:
            #   out_slab[i, b*H*L + h*L + l] = attn[i, l]
            out_ref[:, (b * H + h) * L:(b * H + h + 1) * L] = attn.astype(out_ref.dtype)


def encoder_block_forward(x, params, *, num_features, hidden_size, num_heads,
                          mxu_dtype=jnp.bfloat16):
    B, C, L = x.shape
    assert C == num_features
    assert hidden_size == num_features * num_heads, (
        "torch .view(B, num_features, num_heads, -1) only round-trips when "
        "hidden_size == num_features * num_heads")
    F_, H = num_features, num_heads
    scale = 1.0 / math.sqrt(L)

    # --- glue: bake torch's view/transpose head split into the weights ----------------
    # head h, row i  <-  conv output channel (H*i + h)
    head_idx = num_heads * jnp.arange(F_)[None, :] + jnp.arange(H)[:, None]   # (H, F)

    wq_h = params["wq"][head_idx]            # (H, F, C)
    wk_h = params["wk"][head_idx]
    wv_h = params["wv"][head_idx]
    bq_h = params["bq"][head_idx]            # (H, F)
    bk_h = params["bk"][head_idx]
    bv_h = params["bv"][head_idx]

    # Stack q/k/v per head (q rows pre-scaled by 1/sqrt(d_k)), then flatten over heads.
    w_stack = jnp.concatenate([wq_h * scale, wk_h, wv_h], axis=1)     # (H, 3F, C)
    b_stack = jnp.concatenate([bq_h * scale, bk_h, bv_h], axis=1)     # (H, 3F)
    w2d = w_stack.reshape(H * 3 * F_, C)                              # (H*3F, C)
    b1d = b_stack.reshape(H * 3 * F_)                                 # (H*3F,)

    # Fold bias into the matmul: bias column on W, ones row on x.  Pad the contraction
    # dim to a multiple of 16 (bf16 packs two rows per sublane).
    C_aug = ((C + 1 + 15) // 16) * 16
    pad = C_aug - (C + 1)
    w_aug = jnp.concatenate(
        [w2d, b1d[:, None], jnp.zeros((H * 3 * F_, pad), w2d.dtype)], axis=1)  # (H*3F, C_aug)
    x_aug = jnp.concatenate(
        [x, jnp.ones((B, 1, L), x.dtype), jnp.zeros((B, pad, L), x.dtype)], axis=1)

    # Stack the batch into the lane axis: x_stack[c, b*L + l] = x_aug[b, c, l].
    x_stack = jnp.transpose(x_aug, (1, 0, 2)).reshape(C_aug, B * L)

    w_aug = w_aug.astype(mxu_dtype)
    x_stack = x_stack.astype(mxu_dtype)

    # --- pallas call (single grid step; all blocks = full arrays) ----------------------
    grid_spec = pltpu.PrefetchScalarGridSpec(
        num_scalar_prefetch=0,
        grid=(1,),
        in_specs=[
            pl.BlockSpec((C_aug, B * L), lambda i: (0, 0)),        # activations, lane-dense
            pl.BlockSpec((H * 3 * F_, C_aug), lambda i: (0, 0)),   # stacked weight slab
        ],
        out_specs=pl.BlockSpec((F_, B * H * L), lambda i: (0, 0)),  # lane-dense output slab
    )

    out_slab = pl.pallas_call(
        functools.partial(_encoder_block_kernel,
                          num_heads=H, num_features=F_, batch=B, seq_len=L),
        out_shape=jax.ShapeDtypeStruct((F_, B * H * L), x.dtype),
        grid_spec=grid_spec,
        compiler_params=pltpu.CompilerParams(
            dimension_semantics=("arbitrary",)),
    )(x_stack, w_aug)

    # Cheap XLA-side layout plumbing back to the torch output layout (B, F, H*L):
    #   out[b, i, h*L + l] = out_slab[i, b*H*L + h*L + l]
    return jnp.transpose(out_slab.reshape(F_, B, H * L), (1, 0, 2))


def reference_forward(x, params, *, num_features, hidden_size, num_heads):
    """Pure-JAX (f32) transliteration of the torch forward (dropout = identity)."""
    B, C, L = x.shape

    def conv1x1(w, b):
        return jnp.einsum("oc,bcl->bol", w, x) + b[None, :, None]

    def heads(t):  # (B, hidden, L) -> (B, H, F, L), matching torch view+transpose
        return jnp.transpose(t.reshape(B, num_features, num_heads, L), (0, 2, 1, 3))

    q = heads(conv1x1(params["wq"], params["bq"]))
    k = heads(conv1x1(params["wk"], params["bk"]))
    v = heads(conv1x1(params["wv"], params["bv"]))

    scores = jnp.einsum("bhil,bhjl->bhij", q, k) / math.sqrt(L)
    p = jax.nn.softmax(scores, axis=-1)
    a = jnp.einsum("bhij,bhjl->bhil", p, v)
    return jnp.transpose(a, (0, 2, 1, 3)).reshape(B, num_features, num_heads * L)


def init_params(key, num_features, hidden_size):
    ks = jax.random.split(key, 6)
    s = 1.0 / math.sqrt(num_features)
    return {
        "wq": jax.random.uniform(ks[0], (hidden_size, num_features), jnp.float32, -s, s),
        "bq": jax.random.uniform(ks[1], (hidden_size,), jnp.float32, -s, s),
        "wk": jax.random.uniform(ks[2], (hidden_size, num_features), jnp.float32, -s, s),
        "bk": jax.random.uniform(ks[3], (hidden_size,), jnp.float32, -s, s),
        "wv": jax.random.uniform(ks[4], (hidden_size, num_features), jnp.float32, -s, s),
        "bv": jax.random.uniform(ks[5], (hidden_size,), jnp.float32, -s, s),
    }


if __name__ == "__main__":
    num_features, hidden_size, num_heads = 64, 128, 2
    B, L = 2, 16

    key = jax.random.PRNGKey(0)
    kx, kp = jax.random.split(key)
    x = jax.random.normal(kx, (B, num_features, L), dtype=jnp.float32)
    params = init_params(kp, num_features, hidden_size)

    out = encoder_block_forward(
        x, params,
        num_features=num_features, hidden_size=hidden_size, num_heads=num_heads)
    out = jax.block_until_ready(out)

    ref = reference_forward(
        x, params,
        num_features=num_features, hidden_size=hidden_size, num_heads=num_heads)

    assert out.shape == (B, num_features, num_heads * L), out.shape
    # bf16 MXU operands + approx reciprocal -> relaxed tolerance vs the f32 reference.
    assert jnp.allclose(out, ref, atol=2e-2, rtol=2e-2), (
        float(jnp.max(jnp.abs(out - ref))))

    print("KERNEL_OK")
</pallas_src>

<mosaic_0001>
module attributes {stable_mosaic.version = 11 : i64} {
  func.func @_encoder_block_kernel(%arg0: i32, %arg1: memref<80x32xbf16, #tpu.memory_space<vmem>>, %arg2: memref<384x80xbf16, #tpu.memory_space<vmem>>, %arg3: memref<64x64xf32, #tpu.memory_space<vmem>>) attributes {dimension_semantics = [#tpu.dimension_semantics<arbitrary>], iteration_bounds = array<i64: 1>, scalar_prefetch = 0 : i64, scratch_operands = 0 : i64, tpu.core_type = #tpu.core_type<tc>, window_params = [{pipeline_mode = #tpu.pipeline_mode<synchronous>, transform_indices = @transform_0, window_bounds = array<i64: 80, 32>}, {pipeline_mode = #tpu.pipeline_mode<synchronous>, transform_indices = @transform_1, window_bounds = array<i64: 384, 80>}, {pipeline_mode = #tpu.pipeline_mode<synchronous>, transform_indices = @transform_2, window_bounds = array<i64: 64, 64>}]} {
    %c0 = arith.constant 0 : index
    %c0_0 = arith.constant 0 : index
    %0 = vector.load %arg1[%c0, %c0_0] : memref<80x32xbf16, #tpu.memory_space<vmem>>, vector<80x32xbf16>
    %c0_1 = arith.constant 0 : index
    %c0_2 = arith.constant 0 : index
    %1 = vector.load %arg2[%c0_1, %c0_2] : memref<384x80xbf16, #tpu.memory_space<vmem>>, vector<384x80xbf16>
    %cst = arith.constant dense<0.000000e+00> : vector<384x32xf32>
    %2 = tpu.matmul %1, %0, %cst {dimension_numbers = #tpu.dot_dimension_numbers<[1], [0], [0], [1], [0, 0, 1, 1], [], []>} : vector<384x80xbf16>, vector<80x32xbf16>, vector<384x32xf32> -> vector<384x32xf32>
    %3 = arith.truncf %2 : vector<384x32xf32> to vector<384x32xbf16>
    %4 = vector.extract_strided_slice %3 {offsets = [0, 0], sizes = [64, 16], strides = [1, 1]} : vector<384x32xbf16> to vector<64x16xbf16>
    %5 = vector.extract_strided_slice %3 {offsets = [64, 0], sizes = [64, 16], strides = [1, 1]} : vector<384x32xbf16> to vector<64x16xbf16>
    %6 = vector.extract_strided_slice %3 {offsets = [128, 0], sizes = [64, 16], strides = [1, 1]} : vector<384x32xbf16> to vector<64x16xbf16>
    %cst_3 = arith.constant dense<0.000000e+00> : vector<64x64xf32>
    %7 = tpu.matmul %4, %5, %cst_3 {dimension_numbers = #tpu.dot_dimension_numbers<[1], [1], [0], [0], [0, 0, 1, 0], [], []>} : vector<64x16xbf16>, vector<64x16xbf16>, vector<64x64xf32> -> vector<64x64xf32>
    %cst_4 = arith.constant dense<0xFF800000> : vector<64xf32>
    %8 = vector.multi_reduction <maximumf>, %7, %cst_4 [1] : vector<64x64xf32> to vector<64xf32>
    %9 = vector.shape_cast %8 : vector<64xf32> to vector<64x1xf32>
    %10 = vector.broadcast %9 : vector<64x1xf32> to vector<64x64xf32>
    %11 = arith.subf %7, %10 : vector<64x64xf32>
    %12 = math.exp %11 : vector<64x64xf32>
    %cst_5 = arith.constant dense<0.000000e+00> : vector<64xf32>
    %13 = vector.multi_reduction <add>, %12, %cst_5 [1] : vector<64x64xf32> to vector<64xf32>
    %14 = vector.shape_cast %13 : vector<64xf32> to vector<64x1xf32>
    %15 = tpu.reciprocal %14 {approx = true} : vector<64x1xf32> -> vector<64x1xf32>
    %16 = vector.broadcast %15 : vector<64x1xf32> to vector<64x64xf32>
    %17 = arith.mulf %12, %16 : vector<64x64xf32>
    %18 = arith.truncf %17 : vector<64x64xf32> to vector<64x64xbf16>
    %cst_6 = arith.constant dense<0.000000e+00> : vector<64x16xf32>
    %19 = tpu.matmul %18, %6, %cst_6 {dimension_numbers = #tpu.dot_dimension_numbers<[1], [0], [0], [1], [0, 0, 1, 1], [], []>} : vector<64x64xbf16>, vector<64x16xbf16>, vector<64x16xf32> -> vector<64x16xf32>
    %c0_7 = arith.constant 0 : index
    %c0_8 = arith.constant 0 : index
    %20 = vector.load %arg3[%c0_7, %c0_8] : memref<64x64xf32, #tpu.memory_space<vmem>>, vector<64x16xf32>
    tpu.vector_store %arg3[%c0_7, %c0_8], %19 {strides = array<i32>} : memref<64x64xf32, #tpu.memory_space<vmem>>, vector<64x16xf32>,
    %21 = vector.extract_strided_slice %3 {offsets = [0, 16], sizes = [64, 16], strides = [1, 1]} : vector<384x32xbf16> to vector<64x16xbf16>
    %22 = vector.extract_strided_slice %3 {offsets = [64, 16], sizes = [64, 16], strides = [1, 1]} : vector<384x32xbf16> to vector<64x16xbf16>
    %23 = vector.extract_strided_slice %3 {offsets = [128, 16], sizes = [64, 16], strides = [1, 1]} : vector<384x32xbf16> to vector<64x16xbf16>
    %cst_9 = arith.constant dense<0.000000e+00> : vector<64x64xf32>
    %24 = tpu.matmul %21, %22, %cst_9 {dimension_numbers = #tpu.dot_dimension_numbers<[1], [1], [0], [0], [0, 0, 1, 0], [], []>} : vector<64x16xbf16>, vector<64x16xbf16>, vector<64x64xf32> -> vector<64x64xf32>
    %cst_10 = arith.constant dense<0xFF800000> : vector<64xf32>
    %25 = vector.multi_reduction <maximumf>, %24, %cst_10 [1] : vector<64x64xf32> to vector<64xf32>
    %26 = vector.shape_cast %25 : vector<64xf32> to vector<64x1xf32>
    %27 = vector.broadcast %26 : vector<64x1xf32> to vector<64x64xf32>
    %28 = arith.subf %24, %27 : vector<64x64xf32>
    %29 = math.exp %28 : vector<64x64xf32>
    %cst_11 = arith.constant dense<0.000000e+00> : vector<64xf32>
    %30 = vector.multi_reduction <add>, %29, %cst_11 [1] : vector<64x64xf32> to vector<64xf32>
    %31 = vector.shape_cast %30 : vector<64xf32> to vector<64x1xf32>
    %32 = tpu.reciprocal %31 {approx = true} : vector<64x1xf32> -> vector<64x1xf32>
    %33 = vector.broadcast %32 : vector<64x1xf32> to vector<64x64xf32>
    %34 = arith.mulf %29, %33 : vector<64x64xf32>
    %35 = arith.truncf %34 : vector<64x64xf32> to vector<64x64xbf16>
    %cst_12 = arith.constant dense<0.000000e+00> : vector<64x16xf32>
    %36 = tpu.matmul %35, %23, %cst_12 {dimension_numbers = #tpu.dot_dimension_numbers<[1], [0], [0], [1], [0, 0, 1, 1], [], []>} : vector<64x64xbf16>, vector<64x16xbf16>, vector<64x16xf32> -> vector<64x16xf32>
    %c0_13 = arith.constant 0 : index
    %c32 = arith.constant 32 : index
    %37 = vector.load %arg3[%c0_13, %c32] : memref<64x64xf32, #tpu.memory_space<vmem>>, vector<64x16xf32>
    tpu.vector_store %arg3[%c0_13, %c32], %36 {strides = array<i32>} : memref<64x64xf32, #tpu.memory_space<vmem>>, vector<64x16xf32>,
    %38 = vector.extract_strided_slice %3 {offsets = [192, 0], sizes = [64, 16], strides = [1, 1]} : vector<384x32xbf16> to vector<64x16xbf16>
    %39 = vector.extract_strided_slice %3 {offsets = [256, 0], sizes = [64, 16], strides = [1, 1]} : vector<384x32xbf16> to vector<64x16xbf16>
    %40 = vector.extract_strided_slice %3 {offsets = [320, 0], sizes = [64, 16], strides = [1, 1]} : vector<384x32xbf16> to vector<64x16xbf16>
    %cst_14 = arith.constant dense<0.000000e+00> : vector<64x64xf32>
    %41 = tpu.matmul %38, %39, %cst_14 {dimension_numbers = #tpu.dot_dimension_numbers<[1], [1], [0], [0], [0, 0, 1, 0], [], []>} : vector<64x16xbf16>, vector<64x16xbf16>, vector<64x64xf32> -> vector<64x64xf32>
    %cst_15 = arith.constant dense<0xFF800000> : vector<64xf32>
    %42 = vector.multi_reduction <maximumf>, %41, %cst_15 [1] : vector<64x64xf32> to vector<64xf32>
    %43 = vector.shape_cast %42 : vector<64xf32> to vector<64x1xf32>
    %44 = vector.broadcast %43 : vector<64x1xf32> to vector<64x64xf32>
    %45 = arith.subf %41, %44 : vector<64x64xf32>
    %46 = math.exp %45 : vector<64x64xf32>
    %cst_16 = arith.constant dense<0.000000e+00> : vector<64xf32>
    %47 = vector.multi_reduction <add>, %46, %cst_16 [1] : vector<64x64xf32> to vector<64xf32>
    %48 = vector.shape_cast %47 : vector<64xf32> to vector<64x1xf32>
    %49 = tpu.reciprocal %48 {approx = true} : vector<64x1xf32> -> vector<64x1xf32>
    %50 = vector.broadcast %49 : vector<64x1xf32> to vector<64x64xf32>
    %51 = arith.mulf %46, %50 : vector<64x64xf32>
    %52 = arith.truncf %51 : vector<64x64xf32> to vector<64x64xbf16>
    %cst_17 = arith.constant dense<0.000000e+00> : vector<64x16xf32>
    %53 = tpu.matmul %52, %40, %cst_17 {dimension_numbers = #tpu.dot_dimension_numbers<[1], [0], [0], [1], [0, 0, 1, 1], [], []>} : vector<64x64xbf16>, vector<64x16xbf16>, vector<64x16xf32> -> vector<64x16xf32>
    %c0_18 = arith.constant 0 : index
    %c16 = arith.constant 16 : index
    %54 = vector.load %arg3[%c0_18, %c16] : memref<64x64xf32, #tpu.memory_space<vmem>>, vector<64x16xf32>
    tpu.vector_store %arg3[%c0_18, %c16], %53 {strides = array<i32>} : memref<64x64xf32, #tpu.memory_space<vmem>>, vector<64x16xf32>,
    %55 = vector.extract_strided_slice %3 {offsets = [192, 16], sizes = [64, 16], strides = [1, 1]} : vector<384x32xbf16> to vector<64x16xbf16>
    %56 = vector.extract_strided_slice %3 {offsets = [256, 16], sizes = [64, 16], strides = [1, 1]} : vector<384x32xbf16> to vector<64x16xbf16>
    %57 = vector.extract_strided_slice %3 {offsets = [320, 16], sizes = [64, 16], strides = [1, 1]} : vector<384x32xbf16> to vector<64x16xbf16>
    %cst_19 = arith.constant dense<0.000000e+00> : vector<64x64xf32>
    %58 = tpu.matmul %55, %56, %cst_19 {dimension_numbers = #tpu.dot_dimension_numbers<[1], [1], [0], [0], [0, 0, 1, 0], [], []>} : vector<64x16xbf16>, vector<64x16xbf16>, vector<64x64xf32> -> vector<64x64xf32>
    %cst_20 = arith.constant dense<0xFF800000> : vector<64xf32>
    %59 = vector.multi_reduction <maximumf>, %58, %cst_20 [1] : vector<64x64xf32> to vector<64xf32>
    %60 = vector.shape_cast %59 : vector<64xf32> to vector<64x1xf32>
    %61 = vector.broadcast %60 : vector<64x1xf32> to vector<64x64xf32>
    %62 = arith.subf %58, %61 : vector<64x64xf32>
    %63 = math.exp %62 : vector<64x64xf32>
    %cst_21 = arith.constant dense<0.000000e+00> : vector<64xf32>
    %64 = vector.multi_reduction <add>, %63, %cst_21 [1] : vector<64x64xf32> to vector<64xf32>
    %65 = vector.shape_cast %64 : vector<64xf32> to vector<64x1xf32>
    %66 = tpu.reciprocal %65 {approx = true} : vector<64x1xf32> -> vector<64x1xf32>
    %67 = vector.broadcast %66 : vector<64x1xf32> to vector<64x64xf32>
    %68 = arith.mulf %63, %67 : vector<64x64xf32>
    %69 = arith.truncf %68 : vector<64x64xf32> to vector<64x64xbf16>
    %cst_22 = arith.constant dense<0.000000e+00> : vector<64x16xf32>
    %70 = tpu.matmul %69, %57, %cst_22 {dimension_numbers = #tpu.dot_dimension_numbers<[1], [0], [0], [1], [0, 0, 1, 1], [], []>} : vector<64x64xbf16>, vector<64x16xbf16>, vector<64x16xf32> -> vector<64x16xf32>
    %c0_23 = arith.constant 0 : index
    %c48 = arith.constant 48 : index
    %71 = vector.load %arg3[%c0_23, %c48] : memref<64x64xf32, #tpu.memory_space<vmem>>, vector<64x16xf32>
    tpu.vector_store %arg3[%c0_23, %c48], %70 {strides = array<i32>} : memref<64x64xf32, #tpu.memory_space<vmem>>, vector<64x16xf32>,
    return
  }
  func.func @transform_0(%arg0: i32) -> (i32, i32) {
    %c0_i32 = arith.constant 0 : i32
    %c0_i32_0 = arith.constant 0 : i32
    %c0_i32_1 = arith.constant 0 : i32
    return %c0_i32, %c0_i32_0 : i32, i32
  }
  func.func @transform_1(%arg0: i32) -> (i32, i32) {
    %c0_i32 = arith.constant 0 : i32
    %c0_i32_0 = arith.constant 0 : i32
    %c0_i32_1 = arith.constant 0 : i32
    return %c0_i32, %c0_i32_0 : i32, i32
  }
  func.func @transform_2(%arg0: i32) -> (i32, i32) {
    %c0_i32 = arith.constant 0 : i32
    %c0_i32_0 = arith.constant 0 : i32
    %c0_i32_1 = arith.constant 0 : i32
    return %c0_i32, %c0_i32_0 : i32, i32
  }
}

</mosaic_0001>

<bundles_post_ra>
// kernel: tpu_custom_call.1
= control target key start
LH: loop header
LB: loop body
LE: loop exit
PB: predicated region body
PF: predicated region fallthrough
CT: control target
= control target key end

     0   :  { %vm221_vm0 = vcmask 654336   ;;  %s3048_s0 = inlined_call_operand.vmem [shape: bf16[80,32], index: 0, kind: input, shape index: {}]   ;;  %s3049_s1 = inlined_call_operand.vmem [shape: bf16[384,80], index: 1, kind: input, shape index: {}]   ;;  %s3050_s2 = inlined_call_operand.hbm [shape: f32[64,64], index: 2, kind: output, shape index: {}]  }
   0x1   :  { %v2191_v0 = vld [vmem:[%s3048_s0] sm:$0xff]   ;;  %v2192_v1 = vld [vmem:[%s3048_s0 + $0x8] sm:$0xff]   ;;  %v2193_v2 = vld [vmem:[%s3048_s0 + $0x10] sm:$0xff]  }
   0x2   :  { %1982 = vmatprep.subr.bf16.mxu0 %v2191_v0  ;;  %v2196_v3 = vld [vmem:[%s3049_s1] sm:$0xff]   ;;  %v2194_v4 = vld [vmem:[%s3048_s0 + $0x18] sm:$0xff]   ;;  %v2197_v6 = vld [vmem:[%s3049_s1 + $0x8] sm:$0xff]  }
   0x3   :  { %1983 = vmatpush3.bf16.msra.mxu0 %v2191_v0  ;;  %1992 = vmatprep.mubr.msk.bf16.mxu0 %vm221_vm0, %v2196_v3  ;;  %v2195_v5 = vld [vmem:[%s3048_s0 + $0x20] sm:$0xff]   ;;  %v2198_v7 = vld [vmem:[%s3049_s1 + $0x10] sm:$0xff]  }
   0x4   :  { %1984 = vmatprep.subr.bf16.mxu0 %v2192_v1 }
   0x7   :  { %1985 = vmatpush3.bf16.msra.mxu0 %v2192_v1 }
   0x8   :  { %1986 = vmatprep.subr.bf16.mxu0 %v2193_v2 }
   0xb   :  { %1987 = vmatpush3.bf16.msra.mxu0 %v2193_v2 }
   0xc   :  { %1988 = vmatprep.subr.bf16.mxu0 %v2194_v4 }
   0xf   :  { %1989 = vmatpush3.bf16.msra.mxu0 %v2194_v4 }
  0x10   :  { %1990 = vmatprep.subr.bf16.mxu0 %v2195_v5 }
  0x13   :  { %1991 = vmatpush3.bf16.msra.mxu0 %v2195_v5 }
  0x16   :  { %1993 = vmatmul.mubr.msk.bf16.vlgmr.msra.gmra.mrb[0].mxu0 %vm221_vm0, %v2197_v6 }
  0x17   :  { %1996 = vmatprep.mubr.msk.bf16.mxu0 %vm221_vm0, %v2198_v7 }
  0x18   :  { %7 = vsyncpa [#allocation3], 0  ;;  %v2199_v8 = vld [vmem:[%s3049_s1 + $0x18] sm:$0xff]   ;;  %v2200_v9 = vld [vmem:[%s3049_s1 + $0x20] sm:$0xff]   ;;  %vm543_vm1 = vcmask 130048   ;;  %vm633_vm2 = vcmask 523264  }
  0x19   :  { %v2201_v10 = vld [vmem:[%s3049_s1 + $0x28] sm:$0xff]   ;;  %v2202_v11 = vld [vmem:[%s3049_s1 + $0x30] sm:$0xff]   ;;  %v2203_v12 = vld [vmem:[%s3049_s1 + $0x38] sm:$0xff]   ;;  %s2373_s9 = smov 32   ;;  %s2374_s10 = smov 16   ;;  %vm1141_vm3 = vcmask 392448  }
  0x1a   :  { %v2204_v13 = vld [vmem:[%s3049_s1 + $0x40] sm:$0xff]   ;;  %v2205_v14 = vld [vmem:[%s3049_s1 + $0x48] sm:$0xff]   ;;  %v2206_v15 = vld [vmem:[%s3049_s1 + $0x50] sm:$0xff]   ;;  %vm1440_vm4 = vcmask 261248   ;;  %s2375_s11 = smov 48   ;;  %vm1779_vm5 = vcmask 523648  }
  0x1b   :  { %v2207_v16 = vld [vmem:[%s3049_s1 + $0x58] sm:$0xff]   ;;  %v2208_v17 = vld [vmem:[%s3049_s1 + $0x60] sm:$0xff]   ;;  %v2209_v18 = vld [vmem:[%s3049_s1 + $0x68] sm:$0xff]   ;;  %s2376_s12 = smov [#allocation2]  }
  0x1c   :  { %v2210_v19 = vld [vmem:[%s3049_s1 + $0x70] sm:$0xff]   ;;  %v2211_v20 = vld [vmem:[%s3049_s1 + $0x78] sm:$0xff]   ;;  %v2212_v21 = vld [vmem:[%s3049_s1 + $0x80] sm:$0xff]   ;;  %s1793_s13 = sshll.u32 %s2376_s12, 4  ;;  %s1794_s13 = int_to_ptr.vmem [resolvable:$true] %s1793_s13 }
  0x1d   :  { %v2213_v22 = vld [vmem:[%s3049_s1 + $0x88] sm:$0xff]   ;;  %v2214_v23 = vld [vmem:[%s3049_s1 + $0x90] sm:$0xff]   ;;  %v2215_v24 = vld [vmem:[%s3049_s1 + $0x98] sm:$0xff]   ;;  %s2348_s14 = scalar_lea.vmem %s1794_s13, 1024  ;;  %p2353_p1 = scmp.lt.s32.totalorder %s1794_s13, %s1794_s13 }
  0x1e   :  { %1997 = vmatmul.mubr.msk.bf16.gmra.mrb[4].mxu0 %vm221_vm0, %v2199_v8  ;;  %v2216_v54 = vld [vmem:[%s3049_s1 + $0xa0] sm:$0xff]   ;;  %v2217_v55 = vld [vmem:[%s3049_s1 + $0xa8] sm:$0xff]   ;;  %v2218_v56 = vld [vmem:[%s3049_s1 + $0xb0] sm:$0xff]   ;;  %p2349_p0 = scmp.ne.s32.totalorder %s1794_s13, %s2348_s14  ;;  %p2354_p2 = scmp.lt.s32.totalorder %s2348_s14, %s2348_s14 }
  0x1f   :  { %2000 = vmatprep.mubr.msk.bf16.mxu0 %vm221_vm0, %v2200_v9  ;;  %v2219_v3 = vld [vmem:[%s3049_s1 + $0xb8] sm:$0xff]   ;;  %s2372_s1 = smov 112  }
  0x20   :  { %p2355_p3 = por %p2354_p2, %p2353_p1 }
  0x22   :  { %p2356_p4 = pnand %p2355_p3, %p2349_p0 }
  0x26   :  { %2001 = vmatmul.mubr.msk.bf16.gmra.mrb[8].mxu0 %vm221_vm0, %v2201_v10 }
  0x27   :  { %2004 = vmatprep.mubr.msk.bf16.mxu0 %vm221_vm0, %v2202_v11 }
  0x2e   :  { %2005 = vmatmul.mubr.msk.bf16.gmra.mrb[12].mxu0 %vm221_vm0, %v2203_v12 }
  0x2f   :  { %2008 = vmatprep.mubr.msk.bf16.mxu0 %vm221_vm0, %v2204_v13 }
  0x36   :  { %2009 = vmatmul.mubr.msk.bf16.gmra.mrb[16].mxu0 %vm221_vm0, %v2205_v14 }
  0x37   :  { %2012 = vmatprep.mubr.msk.bf16.mxu0 %vm221_vm0, %v2206_v15 }
  0x3e   :  { %2013 = vmatmul.mubr.msk.bf16.gmra.mrb[20].mxu0 %vm221_vm0, %v2207_v16 }
  0x3f   :  { %2016 = vmatprep.mubr.msk.bf16.mxu0 %vm221_vm0, %v2208_v17 }
  0x46   :  { %2017 = vmatmul.mubr.msk.bf16.gmra.mrb[24].mxu0 %vm221_vm0, %v2209_v18 }
  0x47   :  { %2020 = vmatprep.mubr.msk.bf16.mxu0 %vm221_vm0, %v2210_v19 }
  0x4e   :  { %2021 = vmatmul.mubr.msk.bf16.gmra.mrb[28].mxu0 %vm221_vm0, %v2211_v20 }
  0x4f   :  { %2024 = vmatprep.mubr.msk.bf16.mxu0 %vm221_vm0, %v2212_v21 }
  0x56   :  { %2025 = vmatmul.mubr.msk.bf16.gmra.mrb[32].mxu0 %vm221_vm0, %v2213_v22 }
  0x57   :  { %2028 = vmatprep.mubr.msk.bf16.mxu0 %vm221_vm0, %v2214_v23 }
  0x5e   :  { %2029 = vmatmul.mubr.msk.bf16.gmra.mrb[36].mxu0 %vm221_vm0, %v2215_v24 }
  0x5f   :  { %2032 = vmatprep.mubr.msk.bf16.mxu0 %vm221_vm0, %v2216_v54 }
  0x66   :  { %2033 = vmatmul.mubr.msk.bf16.gmra.mrb[40].mxu0 %vm221_vm0, %v2217_v55 }
  0x67   :  { %2036 = vmatprep.mubr.msk.bf16.mxu0 %vm221_vm0, %v2218_v56 }
  0x6e   :  { %2037 = vmatmul.mubr.msk.bf16.gmra.mrb[44].mxu0 %vm221_vm0, %v2219_v3 }
  0xe9   :  { %v1994_v25 = vpop.f32.mrb[0].mxu0 }
  0xea   :  { %v328_v26 = vpop.f32.mrb[1].mxu0 }
  0xeb   :  { %v1995_v27 = vpop.f32.mrb[2].mxu0 }
  0xec   :  { %v2489_v28 = vpack.c.bf16 %v1995_v27, %v1994_v25  ;;  %v331_v29 = vpop.f32.mrb[3].mxu0 }
  0xed   :  { %v2491_v30 = vpack.c.bf16 %v331_v29, %v328_v26 }
  0xef   :  { %2048 = vmatprep.mubr.msk.bf16.mxu1 %vm543_vm1, %v2491_v30 }
  0xf1   :  { %v1998_v31 = vpop.f32.mrb[4].mxu0 }
  0xf2   :  { %v344_v32 = vpop.f32.mrb[5].mxu0 }
  0xf3   :  { %v1999_v33 = vpop.f32.mrb[6].mxu0 }
  0xf4   :  { %v2495_v34 = vpack.c.bf16 %v1999_v33, %v1998_v31  ;;  %v347_v35 = vpop.f32.mrb[7].mxu0 }
  0xf5   :  { %v2497_v36 = vpack.c.bf16 %v347_v35, %v344_v32 }
  0xf9   :  { %v2002_v37 = vpop.f32.mrb[8].mxu0 }
  0xfa   :  { %v360_v38 = vpop.f32.mrb[9].mxu0 }
  0xfb   :  { %v2003_v39 = vpop.f32.mrb[10].mxu0 }
  0xfc   :  { %v2499_v40 = vpack.c.bf16 %v2003_v39, %v2002_v37  ;;  %v363_v41 = vpop.f32.mrb[11].mxu0 }
  0xfd   :  { %v2501_v42 = vpack.c.bf16 %v363_v41, %v360_v38 }
  0xfe   :  { %v560_v50 = vsel %vm543_vm1, %v2499_v40, 0 }
  0xff   :  { %2168 = vmatprep.subr.msk.bf16.mxu1 %vm543_vm1, %v2501_v42  ;;  %v557_v43 = vsel %vm543_vm1, %v2501_v42, 0 }
 0x100   :  { %2041 = vmatpush3.bf16.xpose.msra.mxu1 %v557_v43 }
 0x101   :  { %2169 = vmatprep.subr.msk.bf16.mxu1 %vm543_vm1, %v2499_v40  ;;  %v2006_v44 = vpop.f32.mrb[12].mxu0 }
 0x102   :  { %v376_v45 = vpop.f32.mrb[13].mxu0 }
 0x103   :  { %v2007_v46 = vpop.f32.mrb[14].mxu0 }
 0x104   :  { %v2509_v47 = vpack.c.bf16 %v2007_v46, %v2006_v44  ;;  %v379_v48 = vpop.f32.mrb[15].mxu0 }
 0x105   :  { %v2511_v49 = vpack.c.bf16 %v379_v48, %v376_v45 }
 0x106   :  { %v566_v52 = vsel %vm543_vm1, %v2509_v47, 0 }
 0x107   :  { %v563_v51 = vsel %vm543_vm1, %v2511_v49, 0 }
 0x108   :  { %2043 = vmatpush3.bf16.xpose.msra.mxu1 %v560_v50 }
 0x109   :  { %2170 = vmatprep.subr.msk.bf16.mxu1 %vm543_vm1, %v2511_v49  ;;  %v2010_v53 = vpop.f32.mrb[16].mxu0 }
 0x10a   :  { %v392_v57 = vpop.f32.mrb[17].mxu0 }
 0x10b   :  { %v2011_v58 = vpop.f32.mrb[18].mxu0 }
 0x10c   :  { %v2539_v59 = vpack.c.bf16 %v2011_v58, %v2010_v53  ;;  %v395_v60 = vpop.f32.mrb[19].mxu0 }
 0x10d   :  { %v2542_v61 = vpack.c.bf16 %v395_v60, %v392_v57 }
 0x110   :  { %2045 = vmatpush3.bf16.xpose.msra.mxu1 %v563_v51 }
 0x111   :  { %2171 = vmatprep.subr.msk.bf16.mxu1 %vm543_vm1, %v2509_v47  ;;  %v2014_v62 = vpop.f32.mrb[20].mxu0 }
 0x112   :  { %v408_v63 = vpop.f32.mrb[21].mxu0 }
 0x113   :  { %v2015_v0 = vpop.f32.mrb[22].mxu0 }
 0x114   :  { %v2546_v1 = vpack.c.bf16 %v2015_v0, %v2014_v62  ;;  %v411_v2 = vpop.f32.mrb[23].mxu0 }
 0x115   :  { %v2552_v4 = vpack.c.bf16 %v411_v2, %v408_v63 }
 0x118   :  { %2047 = vmatpush3.bf16.xpose.msra.mxu1 %v566_v52 }
 0x119   :  { %2056 = vmatprep.subr.bf16.mxu1 %v2542_v61  ;;  %v2018_v5 = vpop.f32.mrb[24].mxu0 }
 0x11a   :  { %v424_v6 = vpop.f32.mrb[25].mxu0 }
 0x11b   :  { %v2019_v7 = vpop.f32.mrb[26].mxu0 }
 0x11c   :  { %v2558_v8 = vpack.c.bf16 %v2019_v7, %v2018_v5  ;;  %v427_v9 = vpop.f32.mrb[27].mxu0 }
 0x11d   :  { %v2560_v10 = vpack.c.bf16 %v427_v9, %v424_v6 }
 0x11f   :  { %2049 = vmatmul.mubr.msk.bf16.vlgmr.msra.gmra.mrb[0].mxu1 %vm543_vm1, %v2489_v28  ;;  %2112 = vmatprep.mubr.msk.bf16.mxu0 %vm543_vm1, %v2560_v10 }
 0x120   :  { %2052 = vmatprep.mubr.msk.bf16.mxu1 %vm543_vm1, %v2497_v36  ;;  %2057 = vmatpush3.bf16.msra.mxu1 %v2542_v61 }
 0x121   :  { %2058 = vmatprep.subr.bf16.mxu1 %v2539_v59  ;;  %v2022_v11 = vpop.f32.mrb[28].mxu0 }
 0x122   :  { %v440_v12 = vpop.f32.mrb[29].mxu0 }
 0x123   :  { %v2023_v13 = vpop.f32.mrb[30].mxu0 }
 0x124   :  { %2059 = vmatpush3.bf16.msra.mxu1 %v2539_v59  ;;  %v2567_v14 = vpack.c.bf16 %v2023_v13, %v2022_v11  ;;  %v443_v15 = vpop.f32.mrb[31].mxu0 }
 0x125   :  { %2060 = vmatprep.subr.bf16.mxu1 %v2552_v4  ;;  %v2569_v16 = vpack.c.bf16 %v443_v15, %v440_v12 }
 0x127   :  { %2053 = vmatmul.mubr.msk.bf16.gmra.mrb[4].mxu1 %vm543_vm1, %v2495_v34 }
 0x128   :  { %2061 = vmatpush3.bf16.msra.mxu1 %v2552_v4 }
 0x129   :  { %2062 = vmatprep.subr.bf16.mxu1 %v2546_v1  ;;  %v2026_v17 = vpop.f32.mrb[32].mxu0 }
 0x12a   :  { %v456_v18 = vpop.f32.mrb[33].mxu0 }
 0x12b   :  { %v2027_v19 = vpop.f32.mrb[34].mxu0 }
 0x12c   :  { %2063 = vmatpush3.bf16.msra.mxu1 %v2546_v1  ;;  %v2571_v20 = vpack.c.bf16 %v2027_v19, %v2026_v17  ;;  %v459_v21 = vpop.f32.mrb[35].mxu0 }
 0x12d   :  { %v2573_v22 = vpack.c.bf16 %v459_v21, %v456_v18 }
 0x12e   :  { %v1166_v31 = vsel %vm543_vm1, %v2571_v20, 0 }
 0x12f   :  { %2176 = vmatprep.subr.msk.bf16.mxu0 %vm543_vm1, %v2573_v22  ;;  %v1163_v23 = vsel %vm543_vm1, %v2573_v22, 0 }
 0x130   :  { %2105 = vmatpush3.bf16.xpose.msra.mxu0 %v1163_v23 }
 0x131   :  { %2177 = vmatprep.subr.msk.bf16.mxu0 %vm543_vm1, %v2571_v20  ;;  %v2030_v24 = vpop.f32.mrb[36].mxu0 }
 0x132   :  { %v472_v25 = vpop.f32.mrb[37].mxu0 }
 0x133   :  { %v2031_v26 = vpop.f32.mrb[38].mxu0 }
 0x134   :  { %v2581_v27 = vpack.c.bf16 %v2031_v26, %v2030_v24  ;;  %v475_v29 = vpop.f32.mrb[39].mxu0 }
 0x135   :  { %v2585_v32 = vpack.c.bf16 %v475_v29, %v472_v25 }
 0x136   :  { %v1172_v35 = vsel %vm543_vm1, %v2581_v27, 0 }
 0x137   :  { %v1169_v33 = vsel %vm543_vm1, %v2585_v32, 0 }
 0x138   :  { %2107 = vmatpush3.bf16.xpose.msra.mxu0 %v1166_v31 }
 0x139   :  { %2178 = vmatprep.subr.msk.bf16.mxu0 %vm543_vm1, %v2585_v32 }
 0x140   :  { %2109 = vmatpush3.bf16.xpose.msra.mxu0 %v1169_v33 }
 0x141   :  { %2179 = vmatprep.subr.msk.bf16.mxu0 %vm543_vm1, %v2581_v27 }
 0x148   :  { %2111 = vmatpush3.bf16.xpose.msra.mxu0 %v1172_v35 }
 0x14f   :  { %2113 = vmatmul.mubr.msk.bf16.vlgmr.msra.gmra.mrb[48].mxu0 %vm543_vm1, %v2558_v8 }
 0x150   :  { %2116 = vmatprep.mubr.msk.bf16.mxu0 %vm543_vm1, %v2569_v16 }
 0x157   :  { %2117 = vmatmul.mubr.msk.bf16.gmra.mrb[52].mxu0 %vm543_vm1, %v2567_v14 }
 0x1f2   :  { %v2050_v37 = vpop.f32.mrb[0].mxu1 }
 0x1f3   :  { %v602_v38 = vpop.f32.mrb[1].mxu1  ;;  %v640_v39 = vsel %vm633_vm2, %v2050_v37, -inf }
 0x1f4   :  { %641 = vmax.xlane.f32.xlu1 %v640_v39  ;;  %v2051_v41 = vpop.f32.mrb[2].mxu1  ;;  %v634_v43 = vsel %vm633_vm2, %v602_v38, -inf }
 0x1f5   :  { %635 = vmax.xlane.f32.xlu0 %v634_v43  ;;  %v605_v44 = vpop.f32.mrb[3].mxu1  ;;  %v643_v45 = vsel %vm633_vm2, %v2051_v41, -inf }
 0x1f6   :  { %v637_v46 = vsel %vm633_vm2, %v605_v44, -inf }
 0x1f8   :  { %644 = vmax.xlane.f32.xlu1 %v643_v45 }
 0x1f9   :  { %638 = vmax.xlane.f32.xlu0 %v637_v46  ;;  %v2034_v46 = vpop.f32.mrb[40].mxu0 }
 0x1fa   :  { %v2054_v48 = vpop.f32.mrb[4].mxu1 }
 0x1fb   :  { %v618_v50 = vpop.f32.mrb[5].mxu1  ;;  %v652_v55 = vsel %vm633_vm2, %v2054_v48, -inf }
 0x1fc   :  { %v2055_v51 = vpop.f32.mrb[6].mxu1  ;;  %v646_v52 = vsel %vm633_vm2, %v618_v50, -inf }
 0x1fd   :  { %647 = vmax.xlane.f32.xlu0 %v646_v52  ;;  %v621_v53 = vpop.f32.mrb[7].mxu1  ;;  %v655_v56 = vsel %vm633_vm2, %v2055_v51, -inf }
 0x1fe   :  { %v649_v54 = vsel %vm633_vm2, %v621_v53, -inf }
 0x1ff   :  { %650 = vmax.xlane.f32.xlu1 %v649_v54 }
 0x201   :  { %653 = vmax.xlane.f32.xlu0 %v652_v55 }
 0x203   :  { %656 = vmax.xlane.f32.xlu1 %v655_v56 }
 0x281   :  { %v642_v57 = vpop.xlane.xlu1 %641 }
 0x282   :  { %v660_v58 = vsub.f32 %v2050_v37, %v642_v57  ;;  %v636_v60 = vpop.xlane.xlu0 %635 }
 0x283   :  { %v658_v62 = vsub.f32 %v602_v38, %v636_v60 }
 0x284   :  { %v670_v63 = vmul.f32 1.442695, %v660_v58 }
 0x285   :  { %v666_v0 = vmul.f32 1.442695, %v658_v62  ;;  %v645_v2 = vpop.xlane.xlu1 %644 }
 0x286   :  { %2220 = vpow2.f32 %v670_v63  ;;  %v661_v3 = vsub.f32 %v2051_v41, %v645_v2  ;;  %v639_v5 = vpop.xlane.xlu0 %638 }
 0x287   :  { %v659_v6 = vsub.f32 %v605_v44, %v639_v5  ;;  %2222 = vpow2.f32 %v666_v0 }
 0x288   :  { %v672_v7 = vmul.f32 1.442695, %v661_v3 }
 0x289   :  { %v668_v9 = vmul.f32 1.442695, %v659_v6 }
 0x28a   :  { %2224 = vpow2.f32 %v672_v7  ;;  %v648_v11 = vpop.xlane.xlu0 %647 }
 0x28b   :  { %2226 = vpow2.f32 %v668_v9  ;;  %v662_v12 = vsub.f32 %v618_v50, %v648_v11 }
 0x28c   :  { %v651_v39 = vpop.xlane.xlu1 %650 }
 0x28d   :  { %v674_v18 = vmul.f32 1.442695, %v662_v12  ;;  %v663_v44 = vsub.f32 %v621_v53, %v651_v39 }
 0x28e   :  { %v654_v13 = vpop.xlane.xlu0 %653 }
 0x28f   :  { %v664_v15 = vsub.f32 %v2054_v48, %v654_v13  ;;  %v676_v48 = vmul.f32 1.442695, %v663_v44 }
 0x290   :  { %v2609_v17 = vpop.eup %2220  ;;  %v657_v41 = vpop.xlane.xlu1 %656 }
 0x291   :  { %v678_v19 = vmul.f32 1.442695, %v664_v15  ;;  %v688_v21 = vsel %vm633_vm2, %v2609_v17, 0.0  ;;  %v2613_v23 = vpop.eup %2222  ;;  %v665_v43 = vsub.f32 %v2055_v51, %v657_v41 }
 0x292   :  { %689 = vadd.xlane.f32.xlu0 %v688_v21  ;;  %v682_v25 = vsel %vm633_vm2, %v2613_v23, 0.0 }
 0x293   :  { %2228 = vpow2.f32 %v678_v19  ;;  %v680_v45 = vmul.f32 1.442695, %v665_v43 }
 0x294   :  { %v2615_v24 = vpop.eup %2224  ;;  %2230 = vpow2.f32 %v674_v18 }
 0x295   :  { %v691_v26 = vsel %vm633_vm2, %v2615_v24, 0.0  ;;  %v2621_v29 = vpop.eup %2226  ;;  %2232 = vpow2.f32 %v680_v45 }
 0x296   :  { %683 = vadd.xlane.f32.xlu0 %v682_v25  ;;  %692 = vadd.xlane.f32.xlu1 %v691_v26  ;;  %v685_v31 = vsel %vm633_vm2, %v2621_v29, 0.0  ;;  %2234 = vpow2.f32 %v676_v48 }
 0x29a   :  { %686 = vadd.xlane.f32.xlu1 %v685_v31 }
 0x29d   :  { %v2625_v33 = vpop.eup %2228 }
 0x29e   :  { %v700_v35 = vsel %vm633_vm2, %v2625_v33, 0.0  ;;  %v2629_v37 = vpop.eup %2230 }
 0x29f   :  { %701 = vadd.xlane.f32.xlu0 %v700_v35  ;;  %v694_v38 = vsel %vm633_vm2, %v2629_v37, 0.0 }
 0x2a3   :  { %695 = vadd.xlane.f32.xlu0 %v694_v38 }
 0x2ab   :  { %829 = vrot.lane.b32.xlu1 %v2499_v40, %s2372_s1  ;;  %v488_v40 = vpop.f32.mrb[41].mxu0 }
 0x2af   :  { %831 = vrot.lane.b32.xlu1 %v2511_v49, %s2372_s1  ;;  %v2035_v49 = vpop.f32.mrb[42].mxu0 }
 0x2b0   :  { %v2643_v50 = vpack.c.bf16 %v2035_v49, %v2034_v46  ;;  %v491_v52 = vpop.f32.mrb[43].mxu0 }
 0x2b1   :  { %v2038_v51 = vpop.f32.mrb[44].mxu0 }
 0x2b2   :  { %v504_v54 = vpop.f32.mrb[45].mxu0 }
 0x2b3   :  { %v2039_v55 = vpop.f32.mrb[46].mxu0 }
 0x2b4   :  { %v2649_v53 = vpack.c.bf16 %v2039_v55, %v2038_v51  ;;  %v507_v56 = vpop.f32.mrb[47].mxu0 }
 0x2b5   :  { %v2653_v57 = vpop.f32.mrb[48].mxu0 }
 0x2b6   :  { %v2655_v58 = vpop.f32.mrb[49].mxu0 }
 0x2b7   :  { %v2659_v62 = vpop.f32.mrb[50].mxu0 }
 0x2b8   :  { %v2663_v0 = vpop.f32.mrb[51].mxu0 }
 0x2b9   :  { %827 = vrot.lane.b32.xlu0 %v2501_v42, %s2372_s1  ;;  %v2645_v42 = vpack.c.bf16 %v491_v52, %v488_v40  ;;  %v1242_v3 = vsel %vm633_vm2, %v2663_v0, -inf  ;;  %v2675_v9 = vpop.f32.mrb[52].mxu0 }
 0x2bd   :  { %815 = vrot.lane.b32.xlu0 %v2491_v30, %s2372_s1  ;;  %v2647_v30 = vpop.eup %2232 }
 0x2be   :  { %v703_v60 = vsel %vm633_vm2, %v2647_v30, 0.0  ;;  %v2661_v63 = vpop.eup %2234 }
 0x2bf   :  { %v697_v2 = vsel %vm633_vm2, %v2661_v63, 0.0 }
 0x2c1   :  { %819 = vrot.lane.b32.xlu0 %v2497_v36, %s2372_s1  ;;  %v2651_v36 = vpack.c.bf16 %v507_v56, %v504_v54 }
 0x2d3   :  { %704 = vadd.xlane.f32.xlu1 %v703_v60 }
 0x2d7   :  { %698 = vadd.xlane.f32.xlu1 %v697_v2 }
 0x2e8   :  { %833 = vrot.lane.b32.xlu1 %v2509_v47, %s2372_s1  ;;  %v2677_v47 = vpop.f32.mrb[53].mxu0 }
 0x2ec   :  { %817 = vrot.lane.b32.xlu1 %v2489_v28, %s2372_s1  ;;  %v2679_v28 = vpop.f32.mrb[54].mxu0 }
 0x2ed   :  { %v2681_v12 = vpop.f32.mrb[55].mxu0 }
 0x2f0   :  { %821 = vrot.lane.b32.xlu1 %v2495_v34, %s2372_s1 }
 0x314   :  { %1243 = vmax.xlane.f32.xlu1 %v1242_v3 }
 0x31f   :  { %v690_v5 = vpop.xlane.xlu0 %689 }
 0x323   :  { %v684_v6 = vpop.xlane.xlu0 %683  ;;  %v693_v7 = vpop.xlane.xlu1 %692 }
 0x324   :  { %2236 = vrcp.f32 %v693_v7 }
 0x325   :  { %2238 = vrcp.f32 %v684_v6 }
 0x326   :  { %2240 = vrcp.f32 %v690_v5 }
 0x327   :  { %v687_v11 = vpop.xlane.xlu1 %686 }
 0x328   :  { %2242 = vrcp.f32 %v687_v11 }
 0x32b   :  { %v830_v44 = vpop.permute.xlu1 %829 }
 0x32c   :  { %v702_v34 = vpop.xlane.xlu0 %701 }
 0x32e   :  { %v2237_v13 = vpop.eup %2236 }
 0x32f   :  { %v2239_v15 = vpop.eup %2238  ;;  %v717_v25 = vmul.f32 %v2237_v13, %v2615_v24  ;;  %v832_v24 = vpop.permute.xlu1 %831 }
 0x330   :  { %v696_v18 = vpop.xlane.xlu0 %695  ;;  %v2241_v19 = vpop.eup %2240  ;;  %v714_v26 = vmul.f32 %v2239_v15, %v2613_v23  ;;  %v851_v23 = vsel %vm543_vm1, %v830_v44, 0 }
 0x331   :  { %v716_v35 = vmul.f32 %v2241_v19, %v2609_v17  ;;  %v854_v17 = vsel %vm543_vm1, %v832_v24, 0 }
 0x332   :  { %v2243_v21 = vpop.eup %2242 }
 0x333   :  { %v715_v31 = vmul.f32 %v2243_v21, %v2621_v29  ;;  %v723_v41 = vpack.c.bf16 %v717_v25, %v716_v35 }
 0x334   :  { %v828_v38 = vpop.permute.xlu0 %827 }
 0x335   :  { %2172 = vmatprep.subr.msk.bf16.mxu1 %vm543_vm1, %v828_v38  ;;  %v722_v39 = vpack.c.bf16 %v715_v31, %v714_v26  ;;  %v848_v43 = vsel %vm543_vm1, %v828_v38, 0 }
 0x337   :  { %2064 = vmatprep.mubr.msk.bf16.mxu1 %vm633_vm2, %v722_v39 }
 0x338   :  { %2065 = vmatmul.mubr.msk.bf16.vlgmr.msra.gmra.mrb[8].mxu1 %vm633_vm2, %v723_v41  ;;  %v816_v5 = vpop.permute.xlu0 %815  ;;  %v1248_v41 = vsel %vm633_vm2, %v2659_v62, -inf }
 0x339   :  { %2073 = vmatpush3.bf16.xpose.msra.mxu1 %v848_v43 }
 0x33a   :  { %2173 = vmatprep.subr.msk.bf16.mxu1 %vm543_vm1, %v830_v44 }
 0x33c   :  { %v820_v7 = vpop.permute.xlu0 %819 }
 0x341   :  { %2075 = vmatpush3.bf16.xpose.msra.mxu1 %v851_v23 }
 0x342   :  { %2174 = vmatprep.subr.msk.bf16.mxu1 %vm543_vm1, %v832_v24 }
 0x349   :  { %2077 = vmatpush3.bf16.xpose.msra.mxu1 %v854_v17  ;;  %v1254_v17 = vsel %vm633_vm2, %v2681_v12, -inf }
 0x360   :  { %v705_v29 = vpop.xlane.xlu1 %704 }
 0x361   :  { %2244 = vrcp.f32 %v705_v29  ;;  %v1239_v29 = vsel %vm633_vm2, %v2655_v58, -inf }
 0x362   :  { %2246 = vrcp.f32 %v696_v18 }
 0x363   :  { %2248 = vrcp.f32 %v702_v34 }
 0x364   :  { %v699_v45 = vpop.xlane.xlu1 %698 }
 0x365   :  { %2250 = vrcp.f32 %v699_v45  ;;  %v1260_v45 = vsel %vm633_vm2, %v2679_v28, -inf }
 0x368   :  { %v834_v46 = vpop.permute.xlu1 %833 }
 0x369   :  { %v857_v48 = vsel %vm543_vm1, %v834_v46, 0  ;;  %2175 = vmatprep.subr.msk.bf16.mxu1 %vm543_vm1, %v834_v46 }
 0x36a   :  { %2079 = vmatpush3.bf16.xpose.msra.mxu1 %v857_v48 }
 0x36b   :  { %v2245_v40 = vpop.eup %2244 }
 0x36c   :  { %v2247_v49 = vpop.eup %2246  ;;  %v721_v54 = vmul.f32 %v2245_v40, %v2647_v30  ;;  %v818_v6 = vpop.permute.xlu1 %817 }
 0x36d   :  { %v2249_v52 = vpop.eup %2248  ;;  %v718_v55 = vmul.f32 %v2247_v49, %v2629_v37 }
 0x36e   :  { %v720_v60 = vmul.f32 %v2249_v52, %v2625_v33  ;;  %v1245_v52 = vsel %vm633_vm2, %v2653_v57, -inf }
 0x36f   :  { %v2251_v51 = vpop.eup %2250 }
 0x370   :  { %v719_v56 = vmul.f32 %v2251_v51, %v2661_v63  ;;  %v725_v3 = vpack.c.bf16 %v721_v54, %v720_v60  ;;  %v822_v37 = vpop.permute.xlu1 %821  ;;  %v1251_v51 = vsel %vm633_vm2, %v2677_v47, -inf  ;;  %v1257_v54 = vsel %vm633_vm2, %v2675_v9, -inf }
 0x372   :  { %v724_v2 = vpack.c.bf16 %v719_v56, %v718_v55 }
 0x374   :  { %2068 = vmatprep.mubr.msk.bf16.mxu1 %vm633_vm2, %v724_v2 }
 0x375   :  { %2069 = vmatmul.mubr.msk.bf16.gmra.mrb[12].mxu1 %vm633_vm2, %v725_v3 }
 0x376   :  { %2080 = vmatprep.mubr.msk.bf16.mxu1 %vm543_vm1, %v816_v5 }
 0x37d   :  { %2081 = vmatmul.mubr.msk.bf16.vlgmr.msra.gmra.mrb[16].mxu1 %vm543_vm1, %v818_v6 }
 0x37e   :  { %2084 = vmatprep.mubr.msk.bf16.mxu1 %vm543_vm1, %v820_v7 }
 0x385   :  { %2085 = vmatmul.mubr.msk.bf16.gmra.mrb[20].mxu1 %vm543_vm1, %v822_v37 }
 0x3a1   :  { %v1244_v55 = vpop.xlane.xlu1 %1243 }
 0x3a2   :  { %v1264_v56 = vsub.f32 %v2663_v0, %v1244_v55 }
 0x3a4   :  { %v1273_v60 = vmul.f32 1.442695, %v1264_v56 }
 0x3a6   :  { %2252 = vpow2.f32 %v1273_v60 }
 0x3b0   :  { %v2759_v2 = vpop.eup %2252 }
 0x3b1   :  { %v1290_v3 = vsel %vm633_vm2, %v2759_v2, 0.0 }
 0x40b   :  { %v2066_v30 = vpop.f32.mrb[8].mxu1 }
 0x40c   :  { %805 = vst.msk [vmem:[#allocation2 + $0x10] sm:$0xff] %vm543_vm1, %v2066_v30  ;;  %v772_v33 = vpop.f32.mrb[9].mxu1 }
 0x40d   :  { %803 = vst.msk [vmem:[#allocation2] sm:$0xff] %vm543_vm1, %v772_v33  ;;  %v2067_v63 = vpop.f32.mrb[10].mxu1 }
 0x40e   :  { %806 = vst.msk [vmem:[#allocation2 + $0x18] sm:$0xff] %vm543_vm1, %v2067_v63  ;;  %v775_v11 = vpop.f32.mrb[11].mxu1 }
 0x40f   :  { %804 = vst.msk [vmem:[#allocation2 + $0x8] sm:$0xff] %vm543_vm1, %v775_v11 }
 0x448   :  { %v2070_v34 = vpop.f32.mrb[12].mxu1 }
 0x449   :  { %809 = vst.msk [vmem:[#allocation2 + $0x30] sm:$0xff] %vm543_vm1, %v2070_v34  ;;  %v788_v13 = vpop.f32.mrb[13].mxu1 }
 0x44a   :  { %807 = vst.msk [vmem:[#allocation2 + $0x20] sm:$0xff] %vm543_vm1, %v788_v13  ;;  %v2071_v15 = vpop.f32.mrb[14].mxu1 }
 0x44b   :  { %810 = vst.msk [vmem:[#allocation2 + $0x38] sm:$0xff] %vm543_vm1, %v2071_v15  ;;  %v791_v18 = vpop.f32.mrb[15].mxu1 }
 0x44c   :  { %808 = vst.msk [vmem:[#allocation2 + $0x28] sm:$0xff] %vm543_vm1, %v791_v18 }
 0x450   :  { %v2082_v19 = vpop.f32.mrb[16].mxu1 }
 0x451   :  { %v893_v21 = vpop.f32.mrb[17].mxu1  ;;  %v930_v25 = vsel %vm633_vm2, %v2082_v19, -inf }
 0x452   :  { %931 = vmax.xlane.f32.xlu0 %v930_v25  ;;  %v2083_v26 = vpop.f32.mrb[18].mxu1  ;;  %v924_v38 = vsel %vm633_vm2, %v893_v21, -inf }
 0x453   :  { %v2716_v31 = vpop.f32.mrb[19].mxu1  ;;  %v933_v44 = vsel %vm633_vm2, %v2083_v26, -inf }
 0x454   :  { %v927_v35 = vsel %vm633_vm2, %v2716_v31, -inf }
 0x455   :  { %928 = vmax.xlane.f32.xlu1 %v927_v35 }
 0x456   :  { %925 = vmax.xlane.f32.xlu0 %v924_v38 }
 0x458   :  { %v2721_v39 = vpop.f32.mrb[20].mxu1 }
 0x459   :  { %v2725_v43 = vpop.f32.mrb[21].mxu1  ;;  %1249 = vmax.xlane.f32.xlu1 %v1248_v41  ;;  %v942_v46 = vsel %vm633_vm2, %v2721_v39, -inf }
 0x45a   :  { %934 = vmax.xlane.f32.xlu0 %v933_v44  ;;  %v2728_v23 = vpop.f32.mrb[22].mxu1  ;;  %v936_v40 = vsel %vm633_vm2, %v2725_v43, -inf }
 0x45b   :  { %v2730_v24 = vpop.f32.mrb[23].mxu1  ;;  %v945_v48 = vsel %vm633_vm2, %v2728_v23, -inf }
 0x45c   :  { %v939_v49 = vsel %vm633_vm2, %v2730_v24, -inf }
 0x45d   :  { %1255 = vmax.xlane.f32.xlu1 %v1254_v17 }
 0x45e   :  { %1240 = vmax.xlane.f32.xlu0 %v1239_v29 }
 0x461   :  { %1261 = vmax.xlane.f32.xlu1 %v1260_v45 }
 0x462   :  { %943 = vmax.xlane.f32.xlu0 %v942_v46 }
 0x465   :  { %946 = vmax.xlane.f32.xlu1 %v945_v48 }
 0x466   :  { %937 = vmax.xlane.f32.xlu0 %v936_v40 }
 0x469   :  { %940 = vmax.xlane.f32.xlu1 %v939_v49 }
 0x46a   :  { %1246 = vmax.xlane.f32.xlu0 %v1245_v52 }
 0x46e   :  { %1252 = vmax.xlane.f32.xlu0 %v1251_v51 }
 0x472   :  { %1258 = vmax.xlane.f32.xlu0 %v1257_v54 }
 0x47a   :  { %1022 = vrot.lane.b32.xlu1 %v2539_v59, %s2372_s1 }
 0x488   :  { %1020 = vrot.lane.b32.xlu0 %v2542_v61, %s2372_s1 }
 0x48c   :  { %1024 = vrot.lane.b32.xlu0 %v2552_v4, %s2372_s1 }
 0x4ab   :  { %1291 = vadd.xlane.f32.xlu0 %v1290_v3 }
 0x4df   :  { %v932_v5 = vpop.xlane.xlu0 %931 }
 0x4e0   :  { %v950_v6 = vsub.f32 %v2082_v19, %v932_v5 }
 0x4e2   :  { %v960_v59 = vmul.f32 1.442695, %v950_v6  ;;  %v929_v7 = vpop.xlane.xlu1 %928 }
 0x4e3   :  { %v926_v37 = vpop.xlane.xlu0 %925  ;;  %v949_v15 = vsub.f32 %v2716_v31, %v929_v7 }
 0x4e4   :  { %2254 = vpow2.f32 %v960_v59  ;;  %v948_v61 = vsub.f32 %v893_v21, %v926_v37 }
 0x4e6   :  { %v956_v30 = vmul.f32 1.442695, %v948_v61  ;;  %v1250_v4 = vpop.xlane.xlu1 %1249 }
 0x4e7   :  { %v935_v33 = vpop.xlane.xlu0 %934  ;;  %v1266_v17 = vsub.f32 %v2659_v62, %v1250_v4 }
 0x4e8   :  { %2256 = vpow2.f32 %v956_v30  ;;  %v951_v0 = vsub.f32 %v2083_v26, %v935_v33  ;;  %v958_v26 = vmul.f32 1.442695, %v949_v15 }
 0x4e9   :  { %v1277_v49 = vmul.f32 1.442695, %v1266_v17 }
 0x4ea   :  { %v1256_v63 = vpop.xlane.xlu1 %1255  ;;  %v962_v18 = vmul.f32 1.442695, %v951_v0 }
 0x4eb   :  { %v1241_v11 = vpop.xlane.xlu0 %1240  ;;  %v1268_v6 = vsub.f32 %v2681_v12, %v1256_v63 }
 0x4ec   :  { %v1263_v34 = vsub.f32 %v2655_v58, %v1241_v11 }
 0x4ed   :  { %v1281_v4 = vmul.f32 1.442695, %v1268_v6 }
 0x4ee   :  { %v2764_v13 = vpop.eup %2254  ;;  %v1271_v19 = vmul.f32 1.442695, %v1263_v34  ;;  %v2767_v25 = vpop.xlane.xlu1 %1261 }
 0x4ef   :  { %v944_v35 = vpop.xlane.xlu0 %943  ;;  %v978_v21 = vsel %vm633_vm2, %v2764_v13, 0.0  ;;  %v1270_v15 = vsub.f32 %v2679_v28, %v2767_v25 }
 0x4f0   :  { %2258 = vpow2.f32 %v1271_v19  ;;  %979 = vadd.xlane.f32.xlu0 %v978_v21  ;;  %v954_v58 = vsub.f32 %v2721_v39, %v944_v35 }
 0x4f1   :  { %2260 = vpow2.f32 %v962_v18 }
 0x4f2   :  { %v2771_v38 = vpop.eup %2256  ;;  %v947_v41 = vpop.xlane.xlu1 %946  ;;  %2262 = vpow2.f32 %v958_v26  ;;  %v968_v29 = vmul.f32 1.442695, %v954_v58  ;;  %v1285_v26 = vmul.f32 1.442695, %v1270_v15 }
 0x4f3   :  { %v938_v44 = vpop.xlane.xlu0 %937  ;;  %v972_v31 = vsel %vm633_vm2, %v2771_v38, 0.0  ;;  %v955_v45 = vsub.f32 %v2728_v23, %v947_v41 }
 0x4f4   :  { %973 = vadd.xlane.f32.xlu0 %v972_v31  ;;  %v952_v52 = vsub.f32 %v2725_v43, %v938_v44  ;;  %2264 = vpow2.f32 %v968_v29 }
 0x4f5   :  { %v970_v51 = vmul.f32 1.442695, %v955_v45 }
 0x4f6   :  { %v941_v46 = vpop.xlane.xlu1 %940 }
 0x4f7   :  { %v1247_v48 = vpop.xlane.xlu0 %1246  ;;  %v953_v54 = vsub.f32 %v2730_v24, %v941_v46 }
 0x4f8   :  { %v1265_v40 = vsub.f32 %v2653_v57, %v1247_v48  ;;  %v964_v57 = vmul.f32 1.442695, %v952_v52 }
 0x4f9   :  { %v966_v23 = vmul.f32 1.442695, %v953_v54 }
 0x4fa   :  { %v2780_v39 = vpop.eup %2258  ;;  %v1275_v55 = vmul.f32 1.442695, %v1265_v40 }
 0x4fb   :  { %v1253_v56 = vpop.xlane.xlu0 %1252  ;;  %v1287_v62 = vsel %vm633_vm2, %v2780_v39, 0.0  ;;  %v2785_v60 = vpop.eup %2260 }
 0x4fc   :  { %2266 = vpow2.f32 %v1275_v55  ;;  %1288 = vadd.xlane.f32.xlu1 %v1287_v62  ;;  %v1267_v43 = vsub.f32 %v2677_v47, %v1253_v56  ;;  %v981_v5 = vsel %vm633_vm2, %v2785_v60, 0.0  ;;  %v2790_v24 = vpop.eup %2262  ;;  %v1023_v47 = vpop.permute.xlu1 %1022 }
 0x4fd   :  { %2268 = vpow2.f32 %v1277_v49  ;;  %v975_v37 = vsel %vm633_vm2, %v2790_v24, 0.0 }
 0x4fe   :  { %2270 = vpow2.f32 %v970_v51  ;;  %v1279_v59 = vmul.f32 1.442695, %v1267_v43  ;;  %v2795_v61 = vpop.eup %2264 }
 0x4ff   :  { %v1259_v3 = vpop.xlane.xlu0 %1258  ;;  %2272 = vpow2.f32 %v964_v57  ;;  %v990_v63 = vsel %vm633_vm2, %v2795_v61, 0.0 }
 0x500   :  { %982 = vadd.xlane.f32.xlu1 %v981_v5  ;;  %2274 = vpow2.f32 %v966_v23  ;;  %v1269_v33 = vsub.f32 %v2675_v9, %v1259_v3 }
 0x501   :  { %2276 = vpow2.f32 %v1279_v59 }
 0x502   :  { %2278 = vpow2.f32 %v1281_v4  ;;  %v1283_v9 = vmul.f32 1.442695, %v1269_v33 }
 0x503   :  { %v1021_v7 = vpop.permute.xlu0 %1020 }
 0x504   :  { %2088 = vmatprep.subr.bf16.mxu1 %v1021_v7  ;;  %976 = vadd.xlane.f32.xlu1 %v975_v37  ;;  %2280 = vpow2.f32 %v1283_v9 }
 0x505   :  { %2089 = vmatpush3.bf16.msra.mxu1 %v1021_v7  ;;  %2282 = vpow2.f32 %v1285_v26 }
 0x506   :  { %v2797_v30 = vpop.eup %2266  ;;  %2090 = vmatprep.subr.bf16.mxu1 %v1023_v47 }
 0x507   :  { %v2800_v12 = vpop.eup %2268  ;;  %v1293_v0 = vsel %vm633_vm2, %v2797_v30, 0.0  ;;  %v1025_v34 = vpop.permute.xlu0 %1024 }
 0x508   :  { %v2806_v11 = vpop.eup %2270  ;;  %1294 = vadd.xlane.f32.xlu0 %v1293_v0  ;;  %991 = vadd.xlane.f32.xlu1 %v990_v63  ;;  %v1296_v19 = vsel %vm633_vm2, %v2800_v12, 0.0 }
 0x509   :  { %2091 = vmatpush3.bf16.msra.mxu1 %v1023_v47  ;;  %v2810_v18 = vpop.eup %2272  ;;  %v993_v35 = vsel %vm633_vm2, %v2806_v11, 0.0 }
 0x50a   :  { %2092 = vmatprep.subr.bf16.mxu1 %v1025_v34  ;;  %v2816_v21 = vpop.eup %2274  ;;  %v984_v28 = vsel %vm633_vm2, %v2810_v18, 0.0 }
 0x50b   :  { %v987_v25 = vsel %vm633_vm2, %v2816_v21, 0.0  ;;  %v2822_v58 = vpop.eup %2276 }
 0x50c   :  { %1297 = vadd.xlane.f32.xlu0 %v1296_v19  ;;  %994 = vadd.xlane.f32.xlu1 %v993_v35  ;;  %v1299_v41 = vsel %vm633_vm2, %v2822_v58, 0.0  ;;  %v2826_v44 = vpop.eup %2278 }
 0x50d   :  { %2093 = vmatpush3.bf16.msra.mxu1 %v1025_v34  ;;  %v1302_v31 = vsel %vm633_vm2, %v2826_v44, 0.0 }
 0x50e   :  { %v2830_v17 = vpop.eup %2280 }
 0x50f   :  { %v1305_v29 = vsel %vm633_vm2, %v2830_v17, 0.0  ;;  %v2834_v45 = vpop.eup %2282 }
 0x510   :  { %985 = vadd.xlane.f32.xlu0 %v984_v28  ;;  %988 = vadd.xlane.f32.xlu1 %v987_v25  ;;  %v1308_v46 = vsel %vm633_vm2, %v2834_v45, 0.0 }
 0x514   :  { %1300 = vadd.xlane.f32.xlu0 %v1299_v41 }
 0x518   :  { %1303 = vadd.xlane.f32.xlu0 %v1302_v31 }
 0x51c   :  { %1306 = vadd.xlane.f32.xlu0 %v1305_v29 }
 0x520   :  { %1309 = vadd.xlane.f32.xlu0 %v1308_v46 }
 0x521   :  { %1026 = vrot.lane.b32.xlu1 %v2546_v1, %s2372_s1 }
 0x525   :  { %1465 = vrot.lane.b32.xlu1 %v2573_v22, %s2372_s1 }
 0x529   :  { %1469 = vrot.lane.b32.xlu1 %v2585_v32, %s2372_s1 }
 0x52d   :  { %1471 = vrot.lane.b32.xlu1 %v2581_v27, %s2372_s1 }
 0x531   :  { %1453 = vrot.lane.b32.xlu1 %v2560_v10, %s2372_s1 }
 0x535   :  { %1455 = vrot.lane.b32.xlu1 %v2558_v8, %s2372_s1 }
 0x536   :  { %1467 = vrot.lane.b32.xlu0 %v2571_v20, %s2372_s1 }
 0x538   :  { %v1292_v1 = vpop.xlane.xlu0 %1291 }
 0x539   :  { %1457 = vrot.lane.b32.xlu1 %v2569_v16, %s2372_s1 }
 0x53d   :  { %1459 = vrot.lane.b32.xlu1 %v2567_v14, %s2372_s1 }
 0x57d   :  { %v980_v22 = vpop.xlane.xlu0 %979 }
 0x581   :  { %v974_v48 = vpop.xlane.xlu0 %973 }
 0x582   :  { %2284 = vrcp.f32 %v974_v48 }
 0x589   :  { %v1289_v32 = vpop.xlane.xlu1 %1288 }
 0x58c   :  { %v2285_v52 = vpop.eup %2284 }
 0x58d   :  { %v983_v27 = vpop.xlane.xlu1 %982  ;;  %v1004_v55 = vmul.f32 %v2285_v52, %v2771_v38 }
 0x591   :  { %v977_v40 = vpop.xlane.xlu1 %976 }
 0x592   :  { %2286 = vrcp.f32 %v977_v40 }
 0x593   :  { %2288 = vrcp.f32 %v983_v27 }
 0x594   :  { %2290 = vrcp.f32 %v980_v22 }
 0x595   :  { %v1295_v8 = vpop.xlane.xlu0 %1294  ;;  %v992_v10 = vpop.xlane.xlu1 %991  ;;  %2292 = vrcp.f32 %v1292_v1 }
 0x596   :  { %2294 = vrcp.f32 %v1289_v32 }
 0x599   :  { %v1298_v49 = vpop.xlane.xlu0 %1297  ;;  %v995_v20 = vpop.xlane.xlu1 %994 }
 0x59a   :  { %2296 = vrcp.f32 %v995_v20 }
 0x59b   :  { %2298 = vrcp.f32 %v992_v10 }
 0x59c   :  { %v2287_v16 = vpop.eup %2286 }
 0x59d   :  { %v2289_v14 = vpop.eup %2288  ;;  %v986_v51 = vpop.xlane.xlu0 %985  ;;  %v1005_v56 = vmul.f32 %v2287_v16, %v2790_v24 }
 0x59e   :  { %v989_v54 = vpop.xlane.xlu1 %988  ;;  %2300 = vrcp.f32 %v986_v51  ;;  %v2291_v62 = vpop.eup %2290  ;;  %v1007_v23 = vmul.f32 %v2289_v14, %v2785_v60 }
 0x59f   :  { %2302 = vrcp.f32 %v989_v54  ;;  %v1012_v57 = vpack.c.bf16 %v1005_v56, %v1004_v55  ;;  %v1006_v5 = vmul.f32 %v2291_v62, %v2764_v13  ;;  %v2293_v6 = vpop.eup %2292 }
 0x5a0   :  { %2304 = vrcp.f32 %v1298_v49  ;;  %v2295_v38 = vpop.eup %2294  ;;  %v1320_v9 = vmul.f32 %v2293_v6, %v2759_v2 }
 0x5a1   :  { %v1301_v43 = vpop.xlane.xlu0 %1300  ;;  %2096 = vmatprep.mubr.msk.bf16.mxu1 %vm633_vm2, %v1012_v57  ;;  %v1013_v59 = vpack.c.bf16 %v1007_v23, %v1006_v5  ;;  %2306 = vrcp.f32 %v1295_v8  ;;  %v1319_v63 = vmul.f32 %v2295_v38, %v2780_v39 }
 0x5a2   :  { %v1027_v3 = vpop.permute.xlu1 %1026 }
 0x5a3   :  { %2094 = vmatprep.subr.bf16.mxu1 %v1027_v3 }
 0x5a4   :  { %2095 = vmatpush3.bf16.msra.mxu1 %v1027_v3  ;;  %v2297_v7 = vpop.eup %2296 }
 0x5a5   :  { %2120 = vmatprep.subr.bf16.mxu1 %v2645_v42  ;;  %v1304_v24 = vpop.xlane.xlu0 %1303  ;;  %v2299_v60 = vpop.eup %2298  ;;  %v1011_v33 = vmul.f32 %v2297_v7, %v2806_v11  ;;  %v1327_v11 = vpack.c.bf16 %v1320_v9, %v1319_v63 }
 0x5a6   :  { %2308 = vrcp.f32 %v1304_v24  ;;  %v1010_v34 = vmul.f32 %v2299_v60, %v2795_v61  ;;  %v1466_v19 = vpop.permute.xlu1 %1465 }
 0x5a7   :  { %2097 = vmatmul.mubr.msk.bf16.vlgmr.msra.gmra.mrb[24].mxu1 %vm633_vm2, %v1013_v59  ;;  %2310 = vrcp.f32 %v1301_v43  ;;  %v1486_v48 = vsel %vm543_vm1, %v1466_v19, 0 }
 0x5a8   :  { %2121 = vmatpush3.bf16.msra.mxu1 %v2645_v42  ;;  %v2301_v37 = vpop.eup %2300  ;;  %v1015_v26 = vpack.c.bf16 %v1011_v33, %v1010_v34 }
 0x5a9   :  { %2122 = vmatprep.subr.bf16.mxu1 %v2643_v50  ;;  %v2303_v13 = vpop.eup %2302  ;;  %v1307_v47 = vpop.xlane.xlu0 %1306  ;;  %v1008_v4 = vmul.f32 %v2301_v37, %v2810_v18 }
 0x5aa   :  { %v1009_v0 = vmul.f32 %v2303_v13, %v2816_v21  ;;  %2312 = vrcp.f32 %v1307_v47  ;;  %v2305_v18 = vpop.eup %2304  ;;  %v1470_v41 = vpop.permute.xlu1 %1469 }
 0x5ab   :  { %v2307_v21 = vpop.eup %2306  ;;  %v1322_v28 = vmul.f32 %v2305_v18, %v2800_v12 }
 0x5ac   :  { %2123 = vmatpush3.bf16.msra.mxu1 %v2643_v50  ;;  %v1014_v15 = vpack.c.bf16 %v1009_v0, %v1008_v4  ;;  %v1321_v25 = vmul.f32 %v2307_v21, %v2797_v30 }
 0x5ad   :  { %2124 = vmatprep.subr.bf16.mxu1 %v2651_v36  ;;  %v1310_v35 = vpop.xlane.xlu0 %1309 }
 0x5ae   :  { %2314 = vrcp.f32 %v1310_v35  ;;  %2100 = vmatprep.mubr.msk.bf16.mxu1 %vm633_vm2, %v1014_v15  ;;  %v1328_v29 = vpack.c.bf16 %v1322_v28, %v1321_v25  ;;  %v1472_v12 = vpop.permute.xlu1 %1471 }
 0x5af   :  { %2101 = vmatmul.mubr.msk.bf16.gmra.mrb[28].mxu1 %vm633_vm2, %v1015_v26 }
 0x5b0   :  { %v2309_v39 = vpop.eup %2308  ;;  %2125 = vmatpush3.bf16.msra.mxu1 %v2651_v36  ;;  %2128 = vmatprep.mubr.msk.bf16.mxu1 %vm633_vm2, %v1327_v11 }
 0x5b1   :  { %v2311_v61 = vpop.eup %2310  ;;  %2126 = vmatprep.subr.bf16.mxu1 %v2649_v53  ;;  %v1324_v2 = vmul.f32 %v2309_v39, %v2826_v44  ;;  %v1468_v27 = vpop.permute.xlu0 %1467 }
 0x5b2   :  { %v1323_v31 = vmul.f32 %v2311_v61, %v2822_v58  ;;  %v1454_v58 = vpop.permute.xlu1 %1453  ;;  %v1489_v40 = vsel %vm543_vm1, %v1468_v27, 0 }
 0x5b4   :  { %2127 = vmatpush3.bf16.msra.mxu1 %v2649_v53  ;;  %v2313_v46 = vpop.eup %2312  ;;  %v1329_v1 = vpack.c.bf16 %v1324_v2, %v1323_v31 }
 0x5b5   :  { %2180 = vmatprep.subr.msk.bf16.mxu1 %vm543_vm1, %v1466_v19  ;;  %v1325_v44 = vmul.f32 %v2313_v46, %v2830_v17  ;;  %v1492_v17 = vsel %vm543_vm1, %v1470_v41, 0 }
 0x5b6   :  { %v1456_v8 = vpop.permute.xlu1 %1455 }
 0x5b7   :  { %2129 = vmatmul.mubr.msk.bf16.vlgmr.msra.gmra.mrb[32].mxu1 %vm633_vm2, %v1328_v29 }
 0x5b8   :  { %v2315_v22 = vpop.eup %2314  ;;  %2132 = vmatprep.mubr.msk.bf16.mxu1 %vm633_vm2, %v1329_v1 }
 0x5b9   :  { %v1326_v30 = vmul.f32 %v2315_v22, %v2834_v45  ;;  %v1495_v45 = vsel %vm543_vm1, %v1472_v12, 0 }
 0x5ba   :  { %v1458_v10 = vpop.permute.xlu1 %1457 }
 0x5bb   :  { %v1330_v32 = vpack.c.bf16 %v1326_v30, %v1325_v44 }
 0x5bd   :  { %2137 = vmatpush3.bf16.xpose.msra.mxu1 %v1486_v48 }
 0x5be   :  { %2181 = vmatprep.subr.msk.bf16.mxu1 %vm543_vm1, %v1468_v27  ;;  %v1460_v49 = vpop.permute.xlu1 %1459 }
 0x5bf   :  { %2133 = vmatmul.mubr.msk.bf16.gmra.mrb[36].mxu1 %vm633_vm2, %v1330_v32 }
 0x5c0   :  { %2144 = vmatprep.mubr.msk.bf16.mxu1 %vm543_vm1, %v1454_v58 }
 0x5c5   :  { %2139 = vmatpush3.bf16.xpose.msra.mxu1 %v1489_v40 }
 0x5c6   :  { %2182 = vmatprep.subr.msk.bf16.mxu1 %vm543_vm1, %v1470_v41 }
 0x5cd   :  { %2141 = vmatpush3.bf16.xpose.msra.mxu1 %v1492_v17 }
 0x5ce   :  { %2183 = vmatprep.subr.msk.bf16.mxu1 %vm543_vm1, %v1472_v12 }
 0x5d5   :  { %2143 = vmatpush3.bf16.xpose.msra.mxu1 %v1495_v45 }
 0x5dc   :  { %2145 = vmatmul.mubr.msk.bf16.vlgmr.msra.gmra.mrb[40].mxu1 %vm543_vm1, %v1456_v8 }
 0x5dd   :  { %2148 = vmatprep.mubr.msk.bf16.mxu1 %vm543_vm1, %v1458_v10 }
 0x5e4   :  { %2149 = vmatmul.mubr.msk.bf16.gmra.mrb[44].mxu1 %vm543_vm1, %v1460_v49 }
 0x67a   :  { %v2900_v20 = vpop.f32.mrb[24].mxu1 }
 0x67b   :  { %v2902_v52 = vpop.f32.mrb[25].mxu1 }
 0x67c   :  { %v2904_v16 = vpop.f32.mrb[26].mxu1 }
 0x67d   :  { %v2906_v14 = vpop.f32.mrb[27].mxu1 }
 0x682   :  { %v2908_v51 = vpop.f32.mrb[28].mxu1 }
 0x683   :  { %v2910_v54 = vpop.f32.mrb[29].mxu1 }
 0x684   :  { %v2912_v55 = vpop.f32.mrb[30].mxu1 }
 0x685   :  { %v2914_v56 = vpop.f32.mrb[31].mxu1 }
 0x68a   :  { %v2916_v62 = vpop.f32.mrb[32].mxu1 }
 0x68b   :  { %v2918_v57 = vpop.f32.mrb[33].mxu1 }
 0x68c   :  { %v2920_v23 = vpop.f32.mrb[34].mxu1 }
 0x68d   :  { %v2922_v43 = vpop.f32.mrb[35].mxu1 }
 0x692   :  { %v2924_v3 = vpop.f32.mrb[36].mxu1 }
 0x693   :  { %v2926_v5 = vpop.f32.mrb[37].mxu1 }
 0x694   :  { %v2928_v6 = vpop.f32.mrb[38].mxu1 }
 0x695   :  { %v2930_v59 = vpop.f32.mrb[39].mxu1 }
 0x6af   :  { %v2146_v38 = vpop.f32.mrb[40].mxu1 }
 0x6b0   :  { %v1531_v24 = vpop.f32.mrb[41].mxu1  ;;  %v1568_v47 = vsel %vm633_vm2, %v2146_v38, -inf }
 0x6b1   :  { %v2147_v7 = vpop.f32.mrb[42].mxu1  ;;  %v1562_v60 = vsel %vm633_vm2, %v1531_v24, -inf }
 0x6b2   :  { %1563 = vmax.xlane.f32.xlu0 %v1562_v60  ;;  %v1534_v37 = vpop.f32.mrb[43].mxu1  ;;  %v1571_v63 = vsel %vm633_vm2, %v2147_v7, -inf }
 0x6b3   :  { %v1565_v13 = vsel %vm633_vm2, %v1534_v37, -inf }
 0x6b4   :  { %1566 = vmax.xlane.f32.xlu1 %v1565_v13 }
 0x6b6   :  { %1569 = vmax.xlane.f32.xlu0 %v1568_v47 }
 0x6b7   :  { %v2150_v4 = vpop.f32.mrb[44].mxu1 }
 0x6b8   :  { %v1547_v33 = vpop.f32.mrb[45].mxu1  ;;  %v1580_v35 = vsel %vm633_vm2, %v2150_v4, -inf }
 0x6b9   :  { %v2935_v0 = vpop.f32.mrb[46].mxu1  ;;  %v1574_v9 = vsel %vm633_vm2, %v1547_v33, -inf }
 0x6ba   :  { %1572 = vmax.xlane.f32.xlu0 %v1571_v63  ;;  %v2938_v34 = vpop.f32.mrb[47].mxu1  ;;  %v1583_v19 = vsel %vm633_vm2, %v2935_v0, -inf }
 0x6bb   :  { %v1577_v15 = vsel %vm633_vm2, %v2938_v34, -inf }
 0x6bc   :  { %1578 = vmax.xlane.f32.xlu1 %v1577_v15 }
 0x6be   :  { %1575 = vmax.xlane.f32.xlu0 %v1574_v9 }
 0x6c0   :  { %1584 = vmax.xlane.f32.xlu1 %v1583_v19 }
 0x6c2   :  { %1581 = vmax.xlane.f32.xlu0 %v1580_v35 }
 0x73f   :  { %v1564_v26 = vpop.xlane.xlu0 %1563 }
 0x740   :  { %v1586_v18 = vsub.f32 %v1531_v24, %v1564_v26 }
 0x741   :  { %v1567_v11 = vpop.xlane.xlu1 %1566 }
 0x742   :  { %v1594_v61 = vmul.f32 1.442695, %v1586_v18  ;;  %v1587_v28 = vsub.f32 %v1534_v37, %v1567_v11 }
 0x743   :  { %v1570_v21 = vpop.xlane.xlu0 %1569 }
 0x744   :  { %v1588_v39 = vsub.f32 %v2146_v38, %v1570_v21  ;;  %v1596_v31 = vmul.f32 1.442695, %v1587_v28 }
 0x746   :  { %v1598_v2 = vmul.f32 1.442695, %v1588_v39 }
 0x747   :  { %v1573_v25 = vpop.xlane.xlu0 %1572 }
 0x748   :  { %2316 = vpow2.f32 %v1598_v2  ;;  %v1589_v41 = vsub.f32 %v2147_v7, %v1573_v25 }
 0x749   :  { %2318 = vpow2.f32 %v1594_v61  ;;  %v1579_v7 = vpop.xlane.xlu1 %1578 }
 0x74a   :  { %v1600_v29 = vmul.f32 1.442695, %v1589_v41  ;;  %v1591_v13 = vsub.f32 %v2938_v34, %v1579_v7 }
 0x74b   :  { %v1576_v46 = vpop.xlane.xlu0 %1575 }
 0x74c   :  { %2320 = vpow2.f32 %v1600_v29  ;;  %v1590_v1 = vsub.f32 %v1547_v33, %v1576_v46 }
 0x74d   :  { %2322 = vpow2.f32 %v1596_v31  ;;  %v1585_v60 = vpop.xlane.xlu1 %1584 }
 0x74e   :  { %v1602_v30 = vmul.f32 1.442695, %v1590_v1  ;;  %v1593_v37 = vsub.f32 %v2935_v0, %v1585_v60 }
 0x74f   :  { %v1582_v22 = vpop.xlane.xlu0 %1581 }
 0x750   :  { %v1592_v12 = vsub.f32 %v2150_v4, %v1582_v22  ;;  %v1608_v47 = vmul.f32 1.442695, %v1593_v37 }
 0x752   :  { %v2946_v44 = vpop.eup %2316  ;;  %v1606_v32 = vmul.f32 1.442695, %v1592_v12 }
 0x753   :  { %v1616_v48 = vsel %vm633_vm2, %v2946_v44, 0.0  ;;  %v2950_v27 = vpop.eup %2318 }
 0x754   :  { %2324 = vpow2.f32 %v1606_v32  ;;  %1617 = vadd.xlane.f32.xlu0 %v1616_v48  ;;  %v1610_v40 = vsel %vm633_vm2, %v2950_v27, 0.0 }
 0x755   :  { %2326 = vpow2.f32 %v1602_v30 }
 0x756   :  { %v2952_v58 = vpop.eup %2320  ;;  %2328 = vpow2.f32 %v1608_v47 }
 0x757   :  { %v1619_v17 = vsel %vm633_vm2, %v2952_v58, 0.0  ;;  %v2323_v45 = vpop.eup %2322 }
 0x758   :  { %1611 = vadd.xlane.f32.xlu0 %v1610_v40  ;;  %1620 = vadd.xlane.f32.xlu1 %v1619_v17  ;;  %v1613_v8 = vsel %vm633_vm2, %v2323_v45, 0.0 }
 0x75c   :  { %1614 = vadd.xlane.f32.xlu1 %v1613_v8 }
 0x75e   :  { %v2959_v10 = vpop.eup %2324 }
 0x75f   :  { %v1628_v49 = vsel %vm633_vm2, %v2959_v10, 0.0  ;;  %v2963_v38 = vpop.eup %2326 }
 0x760   :  { %1629 = vadd.xlane.f32.xlu0 %v1628_v49  ;;  %v1622_v24 = vsel %vm633_vm2, %v2963_v38, 0.0 }
 0x764   :  { %1623 = vadd.xlane.f32.xlu0 %v1622_v24 }
 0x76d   :  { %1660 = vrot.lane.b32.xlu1 %v2643_v50, %s2372_s1  ;;  %v1604_v50 = vmul.f32 1.442695, %v1591_v13 }
 0x76f   :  { %2330 = vpow2.f32 %v1604_v50 }
 0x771   :  { %1662 = vrot.lane.b32.xlu1 %v2651_v36, %s2372_s1 }
 0x77a   :  { %1658 = vrot.lane.b32.xlu0 %v2645_v42, %s2372_s1  ;;  %v2980_v42 = vpop.eup %2328 }
 0x77b   :  { %v1631_v36 = vsel %vm633_vm2, %v2980_v42, 0.0 }
 0x77e   :  { %1117 = vrot.lane.b32.xlu0 %v2902_v52, %s2373_s9 }
 0x782   :  { %1121 = vrot.lane.b32.xlu0 %v2900_v20, %s2373_s9  ;;  %v2985_v20 = vpop.eup %2330 }
 0x783   :  { %v1625_v52 = vsel %vm633_vm2, %v2985_v20, 0.0 }
 0x786   :  { %1125 = vrot.lane.b32.xlu0 %v2910_v54, %s2373_s9 }
 0x78a   :  { %1129 = vrot.lane.b32.xlu0 %v2908_v51, %s2373_s9 }
 0x78e   :  { %1416 = vrot.lane.b32.xlu0 %v2918_v57, %s2374_s10 }
 0x792   :  { %1420 = vrot.lane.b32.xlu0 %v2916_v62, %s2374_s10 }
 0x795   :  { %1632 = vadd.xlane.f32.xlu1 %v1631_v36 }
 0x796   :  { %1424 = vrot.lane.b32.xlu0 %v2926_v5, %s2374_s10 }
 0x799   :  { %1626 = vadd.xlane.f32.xlu1 %v1625_v52 }
 0x79a   :  { %1428 = vrot.lane.b32.xlu0 %v2924_v3, %s2374_s10 }
 0x7aa   :  { %1664 = vrot.lane.b32.xlu1 %v2649_v53, %s2372_s1 }
 0x7ae   :  { %1119 = vrot.lane.b32.xlu1 %v2906_v14, %s2373_s9 }
 0x7b2   :  { %1123 = vrot.lane.b32.xlu1 %v2904_v16, %s2373_s9 }
 0x7b6   :  { %1127 = vrot.lane.b32.xlu1 %v2914_v56, %s2373_s9 }
 0x7ba   :  { %1131 = vrot.lane.b32.xlu1 %v2912_v55, %s2373_s9 }
 0x7be   :  { %1418 = vrot.lane.b32.xlu1 %v2922_v43, %s2374_s10 }
 0x7c2   :  { %1422 = vrot.lane.b32.xlu1 %v2920_v23, %s2374_s10 }
 0x7c6   :  { %1426 = vrot.lane.b32.xlu1 %v2930_v59, %s2374_s10 }
 0x7ca   :  { %1430 = vrot.lane.b32.xlu1 %v2928_v6, %s2374_s10 }
 0x7e1   :  { %v1618_v51 = vpop.xlane.xlu0 %1617 }
 0x7e5   :  { %v1612_v54 = vpop.xlane.xlu0 %1611  ;;  %v1621_v62 = vpop.xlane.xlu1 %1620 }
 0x7e6   :  { %2332 = vrcp.f32 %v1612_v54 }
 0x7e9   :  { %v1615_v53 = vpop.xlane.xlu1 %1614 }
 0x7ea   :  { %2334 = vrcp.f32 %v1615_v53 }
 0x7eb   :  { %2336 = vrcp.f32 %v1621_v62 }
 0x7ec   :  { %2338 = vrcp.f32 %v1618_v51 }
 0x7ed   :  { %v1630_v14 = vpop.xlane.xlu0 %1629  ;;  %v1661_v3 = vpop.permute.xlu1 %1660 }
 0x7f0   :  { %v2333_v57 = vpop.eup %2332 }
 0x7f1   :  { %v1624_v16 = vpop.xlane.xlu0 %1623  ;;  %v1642_v43 = vmul.f32 %v2333_v57, %v2950_v27  ;;  %v1663_v59 = vpop.permute.xlu1 %1662 }
 0x7f4   :  { %v2335_v56 = vpop.eup %2334 }
 0x7f5   :  { %v1659_v55 = vpop.permute.xlu0 %1658  ;;  %v1643_v5 = vmul.f32 %v2335_v56, %v2323_v45  ;;  %v2337_v35 = vpop.eup %2336 }
 0x7f6   :  { %2152 = vmatprep.subr.bf16.mxu0 %v1659_v55  ;;  %v2339_v18 = vpop.eup %2338  ;;  %v1645_v11 = vmul.f32 %v2337_v35, %v2952_v58 }
 0x7f7   :  { %2153 = vmatpush3.bf16.msra.mxu0 %v1659_v55  ;;  %v1650_v23 = vpack.c.bf16 %v1643_v5, %v1642_v43  ;;  %v1644_v39 = vmul.f32 %v2339_v18, %v2946_v44 }
 0x7f8   :  { %2154 = vmatprep.subr.bf16.mxu0 %v1661_v3 }
 0x7f9   :  { %v1118_v6 = vpop.permute.xlu0 %1117  ;;  %2160 = vmatprep.mubr.msk.bf16.mxu0 %vm633_vm2, %v1650_v23  ;;  %v1651_v61 = vpack.c.bf16 %v1645_v11, %v1644_v39 }
 0x7fa   :  { %1142 = vst.msk [vmem:[#allocation2] sm:$0xff] %vm1141_vm3, %v1118_v6 }
 0x7fb   :  { %2155 = vmatpush3.bf16.msra.mxu0 %v1661_v3 }
 0x7fc   :  { %2156 = vmatprep.subr.bf16.mxu0 %v1663_v59 }
 0x7fd   :  { %v1122_v4 = vpop.permute.xlu0 %1121 }
 0x7fe   :  { %1144 = vst.msk [vmem:[#allocation2 + $0x10] sm:$0xff] %vm1141_vm3, %v1122_v4 }
 0x7ff   :  { %2157 = vmatpush3.bf16.msra.mxu0 %v1663_v59 }
 0x801   :  { %v1126_v33 = vpop.permute.xlu0 %1125 }
 0x802   :  { %1146 = vst.msk [vmem:[#allocation2 + $0x20] sm:$0xff] %vm1141_vm3, %v1126_v33 }
 0x805   :  { %v1130_v0 = vpop.permute.xlu0 %1129 }
 0x806   :  { %1148 = vst.msk [vmem:[#allocation2 + $0x30] sm:$0xff] %vm1141_vm3, %v1130_v0 }
 0x809   :  { %v1417_v63 = vpop.permute.xlu0 %1416 }
 0x80a   :  { %1441 = vst.msk [vmem:[#allocation2] sm:$0xff] %vm1440_vm4, %v1417_v63 }
 0x80d   :  { %v1421_v34 = vpop.permute.xlu0 %1420 }
 0x80e   :  { %1443 = vst.msk [vmem:[#allocation2 + $0x10] sm:$0xff] %vm1440_vm4, %v1421_v34 }
 0x811   :  { %v1425_v15 = vpop.permute.xlu0 %1424 }
 0x812   :  { %1445 = vst.msk [vmem:[#allocation2 + $0x20] sm:$0xff] %vm1440_vm4, %v1425_v15 }
 0x815   :  { %v1429_v9 = vpop.permute.xlu0 %1428 }
 0x816   :  { %1447 = vst.msk [vmem:[#allocation2 + $0x30] sm:$0xff] %vm1440_vm4, %v1429_v9 }
 0x822   :  { %v1633_v19 = vpop.xlane.xlu1 %1632 }
 0x823   :  { %2340 = vrcp.f32 %v1633_v19 }
 0x824   :  { %2342 = vrcp.f32 %v1624_v16 }
 0x825   :  { %2344 = vrcp.f32 %v1630_v14 }
 0x826   :  { %v1627_v26 = vpop.xlane.xlu1 %1626 }
 0x827   :  { %2346 = vrcp.f32 %v1627_v26 }
 0x82a   :  { %v1665_v21 = vpop.permute.xlu1 %1664 }
 0x82b   :  { %2158 = vmatprep.subr.bf16.mxu0 %v1665_v21 }
 0x82c   :  { %2159 = vmatpush3.bf16.msra.mxu0 %v1665_v21 }
 0x82d   :  { %v2341_v28 = vpop.eup %2340 }
 0x82e   :  { %v1120_v2 = vpop.permute.xlu1 %1119  ;;  %v2343_v25 = vpop.eup %2342  ;;  %v1649_v29 = vmul.f32 %v2341_v28, %v2980_v42 }
 0x82f   :  { %1143 = vst.msk [vmem:[#allocation2 + $0x8] sm:$0xff] %vm1141_vm3, %v1120_v2  ;;  %2161 = vmatmul.mubr.msk.bf16.vlgmr.msra.gmra.mrb[56].mxu0 %vm633_vm2, %v1651_v61  ;;  %v2345_v41 = vpop.eup %2344  ;;  %v1646_v1 = vmul.f32 %v2343_v25, %v2963_v38 }
 0x830   :  { %v1648_v12 = vmul.f32 %v2345_v41, %v2959_v10 }
 0x831   :  { %v2347_v31 = vpop.eup %2346 }
 0x832   :  { %v1124_v46 = vpop.permute.xlu1 %1123  ;;  %v1647_v22 = vmul.f32 %v2347_v31, %v2985_v20  ;;  %v1653_v30 = vpack.c.bf16 %v1649_v29, %v1648_v12 }
 0x833   :  { %1145 = vst.msk [vmem:[#allocation2 + $0x18] sm:$0xff] %vm1141_vm3, %v1124_v46 }
 0x834   :  { %v1652_v44 = vpack.c.bf16 %v1647_v22, %v1646_v1 }
 0x836   :  { %2164 = vmatprep.mubr.msk.bf16.mxu0 %vm633_vm2, %v1652_v44  ;;  %v1128_v32 = vpop.permute.xlu1 %1127 }
 0x837   :  { %1147 = vst.msk [vmem:[#allocation2 + $0x28] sm:$0xff] %vm1141_vm3, %v1128_v32  ;;  %2165 = vmatmul.mubr.msk.bf16.gmra.mrb[60].mxu0 %vm633_vm2, %v1653_v30 }
 0x83a   :  { %v1132_v48 = vpop.permute.xlu1 %1131 }
 0x83b   :  { %1149 = vst.msk [vmem:[#allocation2 + $0x38] sm:$0xff] %vm1141_vm3, %v1132_v48 }
 0x83e   :  { %v1419_v27 = vpop.permute.xlu1 %1418 }
 0x83f   :  { %1442 = vst.msk [vmem:[#allocation2 + $0x8] sm:$0xff] %vm1440_vm4, %v1419_v27 }
 0x842   :  { %v1423_v58 = vpop.permute.xlu1 %1422 }
 0x843   :  { %1444 = vst.msk [vmem:[#allocation2 + $0x18] sm:$0xff] %vm1440_vm4, %v1423_v58 }
 0x846   :  { %v1427_v40 = vpop.permute.xlu1 %1426 }
 0x847   :  { %1446 = vst.msk [vmem:[#allocation2 + $0x28] sm:$0xff] %vm1440_vm4, %v1427_v40 }
 0x84a   :  { %v1431_v17 = vpop.permute.xlu1 %1430 }
 0x84b   :  { %1448 = vst.msk [vmem:[#allocation2 + $0x38] sm:$0xff] %vm1440_vm4, %v1431_v17 }
 0x902   :  { %v2162_v45 = vpop.f32.mrb[56].mxu0 }
 0x903   :  { %1759 = vrot.lane.b32.xlu0 %v2162_v45, %s2375_s11  ;;  %v1716_v8 = vpop.f32.mrb[57].mxu0 }
 0x904   :  { %v2163_v10 = vpop.f32.mrb[58].mxu0 }
 0x905   :  { %1761 = vrot.lane.b32.xlu1 %v2163_v10, %s2375_s11  ;;  %v1719_v49 = vpop.f32.mrb[59].mxu0 }
 0x907   :  { %1755 = vrot.lane.b32.xlu0 %v1716_v8, %s2375_s11 }
 0x909   :  { %1757 = vrot.lane.b32.xlu1 %v1719_v49, %s2375_s11 }
 0x90a   :  { %v2166_v38 = vpop.f32.mrb[60].mxu0 }
 0x90b   :  { %v1732_v24 = vpop.f32.mrb[61].mxu0 }
 0x90c   :  { %1763 = vrot.lane.b32.xlu0 %v1732_v24, %s2375_s11  ;;  %v2167_v7 = vpop.f32.mrb[62].mxu0 }
 0x90d   :  { %v1735_v60 = vpop.f32.mrb[63].mxu0 }
 0x90e   :  { %1765 = vrot.lane.b32.xlu1 %v1735_v60, %s2375_s11 }
 0x910   :  { %1767 = vrot.lane.b32.xlu0 %v2166_v38, %s2375_s11 }
 0x912   :  { %1769 = vrot.lane.b32.xlu1 %v2167_v7, %s2375_s11 }
 0x975   :  { %v1760_v37 = vpop.permute.xlu0 %1759 }
 0x976   :  { %1782 = vst.msk [vmem:[#allocation2 + $0x10] sm:$0xff] %vm1779_vm5, %v1760_v37 }
 0x977   :  { %v1762_v13 = vpop.permute.xlu1 %1761 }
 0x978   :  { %1783 = vst.msk [vmem:[#allocation2 + $0x18] sm:$0xff] %vm1779_vm5, %v1762_v13 }
 0x979   :  { %v1756_v47 = vpop.permute.xlu0 %1755 }
 0x97a   :  { %1780 = vst.msk [vmem:[#allocation2] sm:$0xff] %vm1779_vm5, %v1756_v47 }
 0x97b   :  { %v1758_v50 = vpop.permute.xlu1 %1757 }
 0x97c   :  { %1781 = vst.msk [vmem:[#allocation2 + $0x8] sm:$0xff] %vm1779_vm5, %v1758_v50 }
 0x97e   :  { %v1764_v42 = vpop.permute.xlu0 %1763 }
 0x97f   :  { %1784 = vst.msk [vmem:[#allocation2 + $0x20] sm:$0xff] %vm1779_vm5, %v1764_v42 }
 0x980   :  { %v1766_v36 = vpop.permute.xlu1 %1765 }
 0x981   :  { %1785 = vst.msk [vmem:[#allocation2 + $0x28] sm:$0xff] %vm1779_vm5, %v1766_v36 }
 0x982   :  { %v1768_v20 = vpop.permute.xlu0 %1767 }
 0x983   :  { %1786 = vst.msk [vmem:[#allocation2 + $0x30] sm:$0xff] %vm1779_vm5, %v1768_v20 }
 0x984   :  { %v1770_v52 = vpop.permute.xlu1 %1769 }
 0x985   :  { %1787 = vst.msk [vmem:[#allocation2 + $0x38] sm:$0xff] %vm1779_vm5, %v1770_v52 }
 0x986   :  { %2359 = shalt.err (!%p2356_p4)
}
 0x987   :  { %s2360_s17 = scalar_lea.hbm %s3050_s2, 1024 }
 0x988   :  { %p2361_p5 = scmp.ne.s32.totalorder %s3050_s2, %s2360_s17  ;;  %p2364_p6 = scmp.lt.u32.totalorder %s2360_s17, %s3050_s2 }
 0x98a   :  { %p2366_p7 = pnand %p2364_p6, %p2361_p5 }
 0x98c   :  { %2369 = shalt.err (!%p2366_p7)
}
 0x98d   :  { %s2377_s22 = smov 128   ;;  %s2378_s23 = smov 8  }
 0x98e   :  { %1799 = dma.vmem_to_hbm [thread:$0]  %s1794_s13, 1024, %s3050_s2, [#allocation3], %s2377_s22, %s2377_s22, %s2378_s23  }
 0x98f   :  { %2370 = dma.done.wait [#allocation3], 1024  }
 0x990   :  { %2371 = vsyncadd [#allocation3], 4294966272 }
 0x991   :  { %1803 = vsyncpa [#allocation3], 1 }

</bundles_post_ra>
